<compile_context>
chip_gen: v7x
topology: tpu7x:2x2x1
jax: 0.10.0
libtpu: 0.0.40
codegen_flags: <defaults>
</compile_context>

<pallas_src>
import jax
import jax.numpy as jnp
from jax import lax
from jax.experimental import pallas as pl
from jax.experimental.pallas import tpu as pltpu


def _attn_kernel(scale_ref, q_ref, k_ref, v_ref, o_ref):
    # scale_ref: (1,) f32 in SMEM.
    # q_ref: (H, Sq, D), k_ref: (H, Sk, D), v_ref: (H, Sk, Dv), o_ref: (H, Sq, Dv)
    scale = scale_ref[0]

    # Scale q (O(H*Sq*D) VPU work) instead of the O(H*Sq*Sk) score matrix.
    q = q_ref[...] * scale

    # q @ k^T expressed as a dot_general contracting the last (D) dims directly —
    # no explicit transpose of the K tile through the XLU.
    s = lax.dot_general(
        q,
        k_ref[...],
        dimension_numbers=(((2,), (2,)), ((0,), (0,))),
        preferred_element_type=jnp.float32,
    )  # (H, Sq, Sk)

    # Numerically stable softmax along the last dim; the 1/denom normalization is
    # folded into the (smaller) PV output instead of dividing the score matrix.
    m = jnp.max(s, axis=-1, keepdims=True)
    p = jnp.exp(s - m)
    denom = jnp.sum(p, axis=-1, keepdims=True)

    # TODO(synk): dropout_p defaults to 0.0 (identity); non-zero dropout would need
    # pltpu.prng_seed / pltpu.prng_random_bits and is omitted.
    acc = lax.dot_general(
        p,
        v_ref[...],
        dimension_numbers=(((2,), (1,)), ((0,), (0,))),
        preferred_element_type=jnp.float32,
    )  # (H, Sq, Dv)

    o_ref[...] = (acc * pl.reciprocal(denom)).astype(o_ref.dtype)


def sdpa_pallas(q, k, v, scale_factor):
    """q: (B,H,Sq,D)  k: (B,H,Sk,D)  v: (B,H,Sk,Dv)  scale_factor: (1,1,1,1)."""
    B, H, Sq, D = q.shape
    _, _, Sk, Dk = k.shape
    _, _, Skv, Dv = v.shape
    assert Dk == D and Skv == Sk

    # Scalar parameter goes to SMEM (scalar path), not a VMEM tile.
    scale_smem = scale_factor.reshape(1).astype(jnp.float32)

    cost = pl.CostEstimate(
        flops=2 * B * H * Sq * Sk * (D + Dv),
        transcendentals=B * H * Sq * Sk,
        bytes_accessed=4 * (q.size + k.size + v.size + B * H * Sq * Dv),
    )

    blk = lambda b: (b, 0, 0, 0)

    return pl.pallas_call(
        _attn_kernel,
        out_shape=jax.ShapeDtypeStruct((B, H, Sq, Dv), q.dtype),
        grid_spec=pltpu.PrefetchScalarGridSpec(
            num_scalar_prefetch=0,
            grid=(B,),
            in_specs=[
                pl.BlockSpec(memory_space=pltpu.MemorySpace.SMEM),
                pl.BlockSpec((pl.Squeezed(), H, Sq, D), blk),
                pl.BlockSpec((pl.Squeezed(), H, Sk, D), blk),
                pl.BlockSpec((pl.Squeezed(), H, Sk, Dv), blk),
            ],
            out_specs=pl.BlockSpec((pl.Squeezed(), H, Sq, Dv), blk),
        ),
        compiler_params=pltpu.CompilerParams(
            dimension_semantics=("parallel",),
        ),
        cost_estimate=cost,
    )(scale_smem, q, k, v)


def sdpa_reference(q, k, v, scale_factor):
    qk = jnp.einsum("bhqd,bhkd->bhqk", q, k)
    scaled = qk * scale_factor
    p = jax.nn.softmax(scaled, axis=-1)
    return jnp.einsum("bhqk,bhkd->bhqd", p, v)


if __name__ == "__main__":
    key = jax.random.PRNGKey(0)
    kq, kk, kv = jax.random.split(key, 3)

    # Shapes follow the module's call pattern (B, H, S, D) at small, mutually
    # consistent sizes: q:(1,8,64,32)  k:(1,8,32,32)  v:(1,8,32,32).
    B, H, Sq, Sk, D, Dv = 1, 8, 64, 32, 32, 32
    q = jax.random.normal(kq, (B, H, Sq, D), dtype=jnp.float32)
    k = jax.random.normal(kk, (B, H, Sk, D), dtype=jnp.float32)
    v = jax.random.normal(kv, (B, H, Sk, Dv), dtype=jnp.float32)

    # Parameter from __init__: torch.ones(1, 1, 1, 1) — deterministic init.
    scale_factor = jnp.ones((1, 1, 1, 1), dtype=jnp.float32)

    out = sdpa_pallas(q, k, v, scale_factor)
    out = jax.block_until_ready(out)

    ref = sdpa_reference(q, k, v, scale_factor)
    assert out.shape == (B, H, Sq, Dv)
    assert jnp.allclose(out, ref, atol=1e-5, rtol=1e-5)

    print("KERNEL_OK")
</pallas_src>

<mosaic_0001>
module attributes {stable_mosaic.version = 11 : i64} {
  func.func @_attn_kernel(%arg0: i32, %arg1: memref<1xf32, #tpu.memory_space<smem>>, %arg2: memref<1x8x64x32xf32, #tpu.memory_space<vmem>>, %arg3: memref<1x8x32x32xf32, #tpu.memory_space<vmem>>, %arg4: memref<1x8x32x32xf32, #tpu.memory_space<vmem>>, %arg5: memref<1x8x64x32xf32, #tpu.memory_space<vmem>>) attributes {dimension_semantics = [#tpu.dimension_semantics<parallel>], iteration_bounds = array<i64: 1>, scalar_prefetch = 0 : i64, scratch_operands = 0 : i64, tpu.core_type = #tpu.core_type<tc>, window_params = [{transform_indices = @transform_0, window_bounds = array<i64: 1>}, {transform_indices = @transform_1, window_bounds = array<i64: 1, 8, 64, 32>}, {transform_indices = @transform_2, window_bounds = array<i64: 1, 8, 32, 32>}, {transform_indices = @transform_3, window_bounds = array<i64: 1, 8, 32, 32>}, {transform_indices = @transform_4, window_bounds = array<i64: 1, 8, 64, 32>}]} {
    %c0 = arith.constant 0 : index
    %0 = memref.load %arg1[%c0] : memref<1xf32, #tpu.memory_space<smem>>
    %c0_0 = arith.constant 0 : index
    %c0_1 = arith.constant 0 : index
    %c0_2 = arith.constant 0 : index
    %c0_3 = arith.constant 0 : index
    %1 = vector.load %arg2[%c0_0, %c0_1, %c0_2, %c0_3] : memref<1x8x64x32xf32, #tpu.memory_space<vmem>>, vector<1x8x64x32xf32>
    %2 = vector.shape_cast %1 : vector<1x8x64x32xf32> to vector<8x64x32xf32>
    %3 = vector.broadcast %0 : f32 to vector<8x64x32xf32>
    %4 = arith.mulf %2, %3 : vector<8x64x32xf32>
    %c0_4 = arith.constant 0 : index
    %c0_5 = arith.constant 0 : index
    %c0_6 = arith.constant 0 : index
    %c0_7 = arith.constant 0 : index
    %5 = vector.load %arg3[%c0_4, %c0_5, %c0_6, %c0_7] : memref<1x8x32x32xf32, #tpu.memory_space<vmem>>, vector<1x8x32x32xf32>
    %6 = vector.shape_cast %5 : vector<1x8x32x32xf32> to vector<8x32x32xf32>
    %cst = arith.constant dense<0.000000e+00> : vector<8x64x32xf32>
    %7 = tpu.matmul %4, %6, %cst {dimension_numbers = #tpu.dot_dimension_numbers<[2], [2], [1], [1], [0, 0, 0, 1, 1, 1], [0], [0]>} : vector<8x64x32xf32>, vector<8x32x32xf32>, vector<8x64x32xf32> -> vector<8x64x32xf32>
    %cst_8 = arith.constant dense<0xFF800000> : vector<8x64xf32>
    %8 = vector.multi_reduction <maximumf>, %7, %cst_8 [2] : vector<8x64x32xf32> to vector<8x64xf32>
    %9 = vector.shape_cast %8 : vector<8x64xf32> to vector<8x64x1xf32>
    %10 = vector.broadcast %9 : vector<8x64x1xf32> to vector<8x64x32xf32>
    %11 = arith.subf %7, %10 : vector<8x64x32xf32>
    %12 = math.exp %11 : vector<8x64x32xf32>
    %cst_9 = arith.constant dense<0.000000e+00> : vector<8x64xf32>
    %13 = vector.multi_reduction <add>, %12, %cst_9 [2] : vector<8x64x32xf32> to vector<8x64xf32>
    %14 = vector.shape_cast %13 : vector<8x64xf32> to vector<8x64x1xf32>
    %c0_10 = arith.constant 0 : index
    %c0_11 = arith.constant 0 : index
    %c0_12 = arith.constant 0 : index
    %c0_13 = arith.constant 0 : index
    %15 = vector.load %arg4[%c0_10, %c0_11, %c0_12, %c0_13] : memref<1x8x32x32xf32, #tpu.memory_space<vmem>>, vector<1x8x32x32xf32>
    %16 = vector.shape_cast %15 : vector<1x8x32x32xf32> to vector<8x32x32xf32>
    %cst_14 = arith.constant dense<0.000000e+00> : vector<8x64x32xf32>
    %17 = tpu.matmul %12, %16, %cst_14 {dimension_numbers = #tpu.dot_dimension_numbers<[2], [1], [1], [2], [0, 0, 0, 1, 1, 2], [0], [0]>} : vector<8x64x32xf32>, vector<8x32x32xf32>, vector<8x64x32xf32> -> vector<8x64x32xf32>
    %18 = tpu.reciprocal %14 : vector<8x64x1xf32> -> vector<8x64x1xf32>
    %19 = vector.broadcast %18 : vector<8x64x1xf32> to vector<8x64x32xf32>
    %20 = arith.mulf %17, %19 : vector<8x64x32xf32>
    %c0_15 = arith.constant 0 : index
    %c0_16 = arith.constant 0 : index
    %c0_17 = arith.constant 0 : index
    %c0_18 = arith.constant 0 : index
    %21 = vector.load %arg5[%c0_15, %c0_16, %c0_17, %c0_18] : memref<1x8x64x32xf32, #tpu.memory_space<vmem>>, vector<1x8x64x32xf32>
    %22 = vector.shape_cast %21 : vector<1x8x64x32xf32> to vector<8x64x32xf32>
    %23 = vector.shape_cast %20 : vector<8x64x32xf32> to vector<1x8x64x32xf32>
    tpu.vector_store %arg5[%c0_15, %c0_16, %c0_17, %c0_18], %23 {strides = array<i32>} : memref<1x8x64x32xf32, #tpu.memory_space<vmem>>, vector<1x8x64x32xf32>,
    return
  }
  func.func @transform_0(%arg0: i32) -> i32 {
    %c0_i32 = arith.constant 0 : i32
    %c0_i32_0 = arith.constant 0 : i32
    return %c0_i32 : i32
  }
  func.func @transform_1(%arg0: i32) -> (i32, i32, i32, i32) {
    %c0_i32 = arith.constant 0 : i32
    %c0_i32_0 = arith.constant 0 : i32
    %c0_i32_1 = arith.constant 0 : i32
    %c0_i32_2 = arith.constant 0 : i32
    return %arg0, %c0_i32, %c0_i32_0, %c0_i32_1 : i32, i32, i32, i32
  }
  func.func @transform_2(%arg0: i32) -> (i32, i32, i32, i32) {
    %c0_i32 = arith.constant 0 : i32
    %c0_i32_0 = arith.constant 0 : i32
    %c0_i32_1 = arith.constant 0 : i32
    %c0_i32_2 = arith.constant 0 : i32
    return %arg0, %c0_i32, %c0_i32_0, %c0_i32_1 : i32, i32, i32, i32
  }
  func.func @transform_3(%arg0: i32) -> (i32, i32, i32, i32) {
    %c0_i32 = arith.constant 0 : i32
    %c0_i32_0 = arith.constant 0 : i32
    %c0_i32_1 = arith.constant 0 : i32
    %c0_i32_2 = arith.constant 0 : i32
    return %arg0, %c0_i32, %c0_i32_0, %c0_i32_1 : i32, i32, i32, i32
  }
  func.func @transform_4(%arg0: i32) -> (i32, i32, i32, i32) {
    %c0_i32 = arith.constant 0 : i32
    %c0_i32_0 = arith.constant 0 : i32
    %c0_i32_1 = arith.constant 0 : i32
    %c0_i32_2 = arith.constant 0 : i32
    return %arg0, %c0_i32, %c0_i32_0, %c0_i32_1 : i32, i32, i32, i32
  }
}

</mosaic_0001>

<bundles_post_ra>
// kernel: tpu_custom_call.1
= control target key start
LH: loop header
LB: loop body
LE: loop exit
PB: predicated region body
PF: predicated region fallthrough
CT: control target
= control target key end

     0   :  { %vm180_vm0 = vcmask 261120   ;;  %s5725_s2 = inlined_call_operand.vmem [shape: f32[1,8,32,32], index: 2, kind: input, shape index: {}]   ;;  %s5726_s0 = inlined_call_operand.<no memory space> [shape: f32[1], index: 0, kind: input, shape index: {}]   ;;  %s5727_s1 = inlined_call_operand.vmem [shape: f32[1,8,64,32], index: 1, kind: input, shape index: {}]   ;;  %s5728_s3 = inlined_call_operand.vmem [shape: f32[1,8,32,32], index: 3, kind: input, shape index: {}]   ;;  %s5729_s4 = inlined_call_operand.vmem [shape: f32[1,8,64,32], index: 4, kind: output, shape index: {}]  }
   0x1   :  { %v148_v0 = vld [vmem:[%s5725_s2] sm:$0xff]  ;;  %v149_v1 = vld [vmem:[%s5725_s2 + $0x8] sm:$0xff]  ;;  %vm4266_vm1 = vmpackc.low %vm180_vm0, %vm180_vm0  ;;  %v4282_v7 = vstv %s5726_s0 }
   0x2   :  { %v3817_v3 = vpack.c.bf16 %v149_v1, %v148_v0  ;;  %v152_v4 = vld [vmem:[%s5725_s2 + $0x20] sm:$0xff]  ;;  %v153_v5 = vld [vmem:[%s5725_s2 + $0x28] sm:$0xff]  ;;  %v150_v6 = vld [vmem:[%s5725_s2 + $0x10] sm:$0xff] }
   0x3   :  { %v3829_v8 = vpack.c.bf16 %v153_v5, %v152_v4  ;;  %v151_v9 = vld [vmem:[%s5725_s2 + $0x18] sm:$0xff]  ;;  %v154_v10 = vld [vmem:[%s5725_s2 + $0x30] sm:$0xff]  ;;  %v19_v14 = vld [vmem:[%s5727_s1] sm:$0xff] }
   0x4   :  { %v155_v11 = vld [vmem:[%s5725_s2 + $0x38] sm:$0xff]  ;;  %3819 = vmatprep.subr.msk.bf16.mxu0 %vm4266_vm1, %v3817_v3  ;;  %v3823_v12 = vpack.c.bf16 %v151_v9, %v150_v6  ;;  %v27_v15 = vld [vmem:[%s5727_s1 + $0x40] sm:$0xff]  ;;  %v84_v16 = vmul.f32 %v4282_v7, %v19_v14  ;;  %v157_v19 = vld [vmem:[%s5725_s2 + $0x48] sm:$0xff] }
   0x5   :  { %v3835_v13 = vpack.c.bf16 %v155_v11, %v154_v10  ;;  %3822 = vmatpush3.bf16.xpose.msk.msra.mxu0 %vm4266_vm1, %v3817_v3  ;;  %3831 = vmatprep.subr.msk.bf16.mxu1 %vm4266_vm1, %v3829_v8  ;;  %v92_v17 = vmul.f32 %v4282_v7, %v27_v15  ;;  %v156_v18 = vld [vmem:[%s5725_s2 + $0x40] sm:$0xff]  ;;  %v161_v21 = vld [vmem:[%s5725_s2 + $0x68] sm:$0xff]  ;;  %v21_v26 = vld [vmem:[%s5727_s1 + $0x10] sm:$0xff] }
   0x6   :  { %3834 = vmatpush3.bf16.xpose.msk.msra.mxu1 %vm4266_vm1, %v3829_v8  ;;  %3825 = vmatprep.subr.msk.bf16.mxu0 %vm4266_vm1, %v3823_v12  ;;  %v160_v20 = vld [vmem:[%s5725_s2 + $0x60] sm:$0xff]  ;;  %v3841_v22 = vpack.c.bf16 %v157_v19, %v156_v18  ;;  %v20_v24 = vld [vmem:[%s5727_s1 + $0x8] sm:$0xff]  ;;  %v29_v27 = vld [vmem:[%s5727_s1 + $0x50] sm:$0xff]  ;;  %v86_v32 = vmul.f32 %v4282_v7, %v21_v26 }
   0x7   :  { %3837 = vmatprep.subr.msk.bf16.mxu1 %vm4266_vm1, %v3835_v13  ;;  %3505 = vmatprep.mubr.msk.f32.mxu0 %vm180_vm0, %v84_v16  ;;  %v3853_v23 = vpack.c.bf16 %v161_v21, %v160_v20  ;;  %v28_v25 = vld [vmem:[%s5727_s1 + $0x48] sm:$0xff]  ;;  %v85_v28 = vmul.f32 %v4282_v7, %v20_v24  ;;  %v158_v29 = vld [vmem:[%s5725_s2 + $0x50] sm:$0xff]  ;;  %v159_v30 = vld [vmem:[%s5725_s2 + $0x58] sm:$0xff]  ;;  %v94_v36 = vmul.f32 %v4282_v7, %v29_v27 }
   0x8   :  { %3525 = vmatprep.mubr.msk.f32.mxu1 %vm180_vm0, %v92_v17  ;;  %v93_v31 = vmul.f32 %v4282_v7, %v28_v25  ;;  %v22_v33 = vld [vmem:[%s5727_s1 + $0x18] sm:$0xff]  ;;  %v162_v34 = vld [vmem:[%s5725_s2 + $0x70] sm:$0xff]  ;;  %v23_v38 = vld [vmem:[%s5727_s1 + $0x20] sm:$0xff]  ;;  %v3847_v40 = vpack.c.bf16 %v159_v30, %v158_v29 }
   0x9   :  { %v163_v35 = vld [vmem:[%s5725_s2 + $0x78] sm:$0xff]  ;;  %v31_v39 = vld [vmem:[%s5727_s1 + $0x60] sm:$0xff]  ;;  %v87_v41 = vmul.f32 %v4282_v7, %v22_v33  ;;  %v88_v44 = vmul.f32 %v4282_v7, %v23_v38  ;;  %v24_v45 = vld [vmem:[%s5727_s1 + $0x28] sm:$0xff] }
   0xa   :  { %v30_v37 = vld [vmem:[%s5727_s1 + $0x58] sm:$0xff]  ;;  %v3859_v42 = vpack.c.bf16 %v163_v35, %v162_v34  ;;  %v96_v46 = vmul.f32 %v4282_v7, %v31_v39  ;;  %v32_v47 = vld [vmem:[%s5727_s1 + $0x68] sm:$0xff]  ;;  %v25_v48 = vld [vmem:[%s5727_s1 + $0x30] sm:$0xff]  ;;  %v89_v51 = vmul.f32 %v4282_v7, %v24_v45 }
   0xb   :  { %v95_v43 = vmul.f32 %v4282_v7, %v30_v37  ;;  %v33_v49 = vld [vmem:[%s5727_s1 + $0x70] sm:$0xff]  ;;  %v26_v50 = vld [vmem:[%s5727_s1 + $0x38] sm:$0xff]  ;;  %v164_v53 = vld [vmem:[%s5725_s2 + $0x80] sm:$0xff]  ;;  %v97_v55 = vmul.f32 %v4282_v7, %v32_v47  ;;  %v90_v56 = vmul.f32 %v4282_v7, %v25_v48 }
   0xc   :  { %v34_v52 = vld [vmem:[%s5727_s1 + $0x78] sm:$0xff]  ;;  %v165_v54 = vld [vmem:[%s5725_s2 + $0x88] sm:$0xff]  ;;  %v35_v57 = vld [vmem:[%s5727_s1 + $0x80] sm:$0xff]  ;;  %v98_v60 = vmul.f32 %v4282_v7, %v33_v49  ;;  %v91_v0 = vmul.f32 %v4282_v7, %v26_v50 }
   0xd   :  { %3828 = vmatpush3.bf16.xpose.msk.msra.mxu0 %vm4266_vm1, %v3823_v12  ;;  %v168_v58 = vld [vmem:[%s5725_s2 + $0xa0] sm:$0xff]  ;;  %v169_v59 = vld [vmem:[%s5725_s2 + $0xa8] sm:$0xff]  ;;  %v4438_v63 = vpack.c.bf16 %v165_v54, %v164_v53  ;;  %v99_v1 = vmul.f32 %v4282_v7, %v34_v52  ;;  %v100_v3 = vmul.f32 %v4282_v7, %v35_v57  ;;  %v37_v10 = vld [vmem:[%s5727_s1 + $0x90] sm:$0xff] }
   0xe   :  { %3840 = vmatpush3.bf16.xpose.msk.msra.mxu1 %vm4266_vm1, %v3835_v13  ;;  %3843 = vmatprep.subr.msk.bf16.mxu0 %vm4266_vm1, %v3841_v22  ;;  %v43_v61 = vld [vmem:[%s5727_s1 + $0xc0] sm:$0xff]  ;;  %v36_v62 = vld [vmem:[%s5727_s1 + $0x88] sm:$0xff]  ;;  %v4444_v4 = vpack.c.bf16 %v169_v59, %v168_v58  ;;  %v69_v13 = vld [vmem:[%s5727_s1 + $0x190] sm:$0xff] }
   0xf   :  { %3855 = vmatprep.subr.msk.bf16.mxu1 %vm4266_vm1, %v3853_v23  ;;  %v68_v5 = vld [vmem:[%s5727_s1 + $0x188] sm:$0xff]  ;;  %v108_v6 = vmul.f32 %v4282_v7, %v43_v61  ;;  %v101_v8 = vmul.f32 %v4282_v7, %v36_v62  ;;  %v77_v14 = vld [vmem:[%s5727_s1 + $0x1d0] sm:$0xff]  ;;  %v4481_v17 = vmul.f32 %v4282_v7, %v69_v13  ;;  %v70_v19 = vld [vmem:[%s5727_s1 + $0x198] sm:$0xff] }
  0x10   :  { %v44_v9 = vld [vmem:[%s5727_s1 + $0xc8] sm:$0xff]  ;;  %v4460_v11 = vmul.f32 %v4282_v7, %v68_v5  ;;  %v45_v15 = vld [vmem:[%s5727_s1 + $0xd0] sm:$0xff]  ;;  %v4484_v18 = vmul.f32 %v4282_v7, %v77_v14  ;;  %v78_v20 = vld [vmem:[%s5727_s1 + $0x1d8] sm:$0xff] }
  0x11   :  { %v76_v12 = vld [vmem:[%s5727_s1 + $0x1c8] sm:$0xff]  ;;  %v71_v21 = vld [vmem:[%s5727_s1 + $0x1a0] sm:$0xff]  ;;  %v74_v33 = vld [vmem:[%s5727_s1 + $0x1b8] sm:$0xff] }
  0x12   :  { %v4478_v16 = vmul.f32 %v4282_v7, %v76_v12  ;;  %v4507_v24 = vmul.f32 %v4282_v7, %v71_v21  ;;  %v79_v25 = vld [vmem:[%s5727_s1 + $0x1e0] sm:$0xff]  ;;  %v72_v26 = vld [vmem:[%s5727_s1 + $0x1a8] sm:$0xff]  ;;  %v166_v34 = vld [vmem:[%s5725_s2 + $0x90] sm:$0xff]  ;;  %v4555_v38 = vmul.f32 %v4282_v7, %v74_v33 }
  0x13   :  { %v80_v27 = vld [vmem:[%s5727_s1 + $0x1e8] sm:$0xff]  ;;  %v4526_v29 = vmul.f32 %v4282_v7, %v72_v26  ;;  %v167_v35 = vld [vmem:[%s5725_s2 + $0x98] sm:$0xff]  ;;  %v39_v48 = vld [vmem:[%s5727_s1 + $0xa0] sm:$0xff] }
  0x14   :  { %3506 = vmatmul.mubr.msk.f32.vlgmr.msra.gmra.mrb[0].mxu0 %vm180_vm0, %v85_v28  ;;  %v4523_v28 = vmul.f32 %v4282_v7, %v79_v25  ;;  %v4529_v30 = vmul.f32 %v4282_v7, %v80_v27  ;;  %v82_v39 = vld [vmem:[%s5727_s1 + $0x1f8] sm:$0xff]  ;;  %v47_v49 = vld [vmem:[%s5727_s1 + $0xe0] sm:$0xff]  ;;  %v3871_v50 = vpack.c.bf16 %v167_v35, %v166_v34  ;;  %v104_v54 = vmul.f32 %v4282_v7, %v39_v48  ;;  %v48_v57 = vld [vmem:[%s5727_s1 + $0xe8] sm:$0xff] }
  0x15   :  { %3526 = vmatmul.mubr.msk.f32.vlgmr.msra.gmra.mrb[0].mxu1 %vm180_vm0, %v93_v31  ;;  %3508 = vmatprep.mubr.msk.f32.mxu0 %vm180_vm0, %v86_v32  ;;  %v73_v31 = vld [vmem:[%s5727_s1 + $0x1b0] sm:$0xff]  ;;  %v4573_v45 = vmul.f32 %v4282_v7, %v82_v39  ;;  %v46_v47 = vld [vmem:[%s5727_s1 + $0xd8] sm:$0xff]  ;;  %v172_v61 = vld [vmem:[%s5725_s2 + $0xc0] sm:$0xff] }
  0x16   :  { %3528 = vmatprep.mubr.msk.f32.mxu1 %vm180_vm0, %v94_v36  ;;  %3846 = vmatpush3.bf16.xpose.msk.msra.mxu0 %vm4266_vm1, %v3841_v22  ;;  %v4501_v22 = vmul.f32 %v4282_v7, %v70_v19  ;;  %v81_v32 = vld [vmem:[%s5727_s1 + $0x1f0] sm:$0xff]  ;;  %v4549_v36 = vmul.f32 %v4282_v7, %v73_v31  ;;  %v111_v53 = vmul.f32 %v4282_v7, %v46_v47  ;;  %v173_v62 = vld [vmem:[%s5725_s2 + $0xc8] sm:$0xff]  ;;  %v54_v35 = vld [vmem:[%s5727_s1 + $0x118] sm:$0xff] }
  0x17   :  { %3858 = vmatpush3.bf16.xpose.msk.msra.mxu1 %vm4266_vm1, %v3853_v23  ;;  %3849 = vmatprep.subr.msk.bf16.mxu0 %vm4266_vm1, %v3847_v40  ;;  %v4504_v23 = vmul.f32 %v4282_v7, %v78_v20  ;;  %v4552_v37 = vmul.f32 %v4282_v7, %v81_v32  ;;  %v41_v58 = vld [vmem:[%s5727_s1 + $0xb0] sm:$0xff]  ;;  %v52_v20 = vld [vmem:[%s5727_s1 + $0x108] sm:$0xff]  ;;  %v175_v32 = vld [vmem:[%s5725_s2 + $0xd8] sm:$0xff]  ;;  %v119_v47 = vmul.f32 %v4282_v7, %v54_v35 }
  0x18   :  { %3509 = vmatmul.mubr.msk.f32.gmra.mrb[2].mxu0 %vm180_vm0, %v87_v41  ;;  %3861 = vmatprep.subr.msk.bf16.mxu1 %vm4266_vm1, %v3859_v42  ;;  %v102_v41 = vmul.f32 %v4282_v7, %v37_v10  ;;  %v49_v59 = vld [vmem:[%s5727_s1 + $0xf0] sm:$0xff]  ;;  %v3889_v10 = vpack.c.bf16 %v173_v62, %v172_v61  ;;  %v60_v21 = vld [vmem:[%s5727_s1 + $0x148] sm:$0xff]  ;;  %v117_v27 = vmul.f32 %v4282_v7, %v52_v20  ;;  %v66_v61 = vld [vmem:[%s5727_s1 + $0x178] sm:$0xff] }
  0x19   :  { %3529 = vmatmul.mubr.msk.f32.gmra.mrb[2].mxu1 %vm180_vm0, %v95_v43  ;;  %3511 = vmatprep.mubr.msk.f32.mxu0 %vm180_vm0, %v88_v44  ;;  %v170_v43 = vld [vmem:[%s5725_s2 + $0xb0] sm:$0xff]  ;;  %v171_v44 = vld [vmem:[%s5725_s2 + $0xb8] sm:$0xff]  ;;  %v114_v5 = vmul.f32 %v4282_v7, %v49_v59  ;;  %v125_v33 = vmul.f32 %v4282_v7, %v60_v21  ;;  %v67_v62 = vld [vmem:[%s5727_s1 + $0x180] sm:$0xff] }
  0x1a   :  { %3531 = vmatprep.mubr.msk.f32.mxu1 %vm180_vm0, %v96_v46  ;;  %v110_v46 = vmul.f32 %v4282_v7, %v45_v15  ;;  %v3883_v52 = vpack.c.bf16 %v171_v44, %v170_v43  ;;  %v53_v25 = vld [vmem:[%s5727_s1 + $0x110] sm:$0xff]  ;;  %v55_v43 = vld [vmem:[%s5727_s1 + $0x120] sm:$0xff]  ;;  %v58_v59 = vld [vmem:[%s5727_s1 + $0x138] sm:$0xff] }
  0x1b   :  { %v61_v26 = vld [vmem:[%s5727_s1 + $0x150] sm:$0xff]  ;;  %v118_v34 = vmul.f32 %v4282_v7, %v53_v25  ;;  %v63_v44 = vld [vmem:[%s5727_s1 + $0x160] sm:$0xff] }
  0x1c   :  { %3512 = vmatmul.mubr.msk.f32.gmra.mrb[4].mxu0 %vm180_vm0, %v89_v51  ;;  %v174_v31 = vld [vmem:[%s5725_s2 + $0xd0] sm:$0xff]  ;;  %v1885_v35 = vld [vmem:[%s5728_s3] sm:$0xff] }
  0x1d   :  { %3532 = vmatmul.mubr.msk.f32.gmra.mrb[4].mxu1 %vm180_vm0, %v97_v55  ;;  %3514 = vmatprep.mubr.msk.f32.mxu0 %vm180_vm0, %v90_v56  ;;  %v40_v55 = vld [vmem:[%s5727_s1 + $0xa8] sm:$0xff]  ;;  %v112_v56 = vmul.f32 %v4282_v7, %v47_v49  ;;  %v178_v39 = vld [vmem:[%s5725_s2 + $0xf0] sm:$0xff] }
  0x1e   :  { %3534 = vmatprep.mubr.msk.f32.mxu1 %vm180_vm0, %v98_v60  ;;  %3852 = vmatpush3.bf16.xpose.msk.msra.mxu0 %vm4266_vm1, %v3847_v40  ;;  %v109_v40 = vmul.f32 %v4282_v7, %v44_v9  ;;  %v105_v60 = vmul.f32 %v4282_v7, %v40_v55  ;;  %v59_v9 = vld [vmem:[%s5727_s1 + $0x140] sm:$0xff]  ;;  %v65_v55 = vld [vmem:[%s5727_s1 + $0x170] sm:$0xff] }
  0x1f   :  { %3864 = vmatpush3.bf16.xpose.msk.msra.mxu1 %vm4266_vm1, %v3859_v42  ;;  %3867 = vmatprep.subr.msk.bf16.mxu0 %vm4266_vm1, %v4438_v63  ;;  %v38_v42 = vld [vmem:[%s5727_s1 + $0x98] sm:$0xff]  ;;  %v124_v19 = vmul.f32 %v4282_v7, %v59_v9 }
  0x20   :  { %3515 = vmatmul.mubr.msk.f32.gmra.mrb[6].mxu0 %vm180_vm0, %v91_v0  ;;  %3879 = vmatprep.subr.msk.bf16.mxu1 %vm4266_vm1, %v4444_v4  ;;  %v103_v51 = vmul.f32 %v4282_v7, %v38_v42  ;;  %v106_v0 = vmul.f32 %v4282_v7, %v41_v58  ;;  %v62_v42 = vld [vmem:[%s5727_s1 + $0x158] sm:$0xff] }
  0x21   :  { %3535 = vmatmul.mubr.msk.f32.gmra.mrb[6].mxu1 %vm180_vm0, %v99_v1  ;;  %3545 = vmatprep.mubr.msk.f32.mxu0 %vm180_vm0, %v100_v3  ;;  %v42_v1 = vld [vmem:[%s5727_s1 + $0xb8] sm:$0xff]  ;;  %v176_v3 = vld [vmem:[%s5725_s2 + $0xe0] sm:$0xff]  ;;  %v127_v49 = vmul.f32 %v4282_v7, %v62_v42 }
  0x22   :  { %3565 = vmatprep.mubr.msk.f32.mxu1 %vm180_vm0, %v108_v6  ;;  %v50_v6 = vld [vmem:[%s5727_s1 + $0xf8] sm:$0xff]  ;;  %v107_v12 = vmul.f32 %v4282_v7, %v42_v1  ;;  %v131_v1 = vmul.f32 %v4282_v7, %v66_v61 }
  0x23   :  { %v115_v14 = vmul.f32 %v4282_v7, %v50_v6  ;;  %v1892_v61 = vld [vmem:[%s5728_s3 + $0x38] sm:$0xff] }
  0x25   :  { %3546 = vmatmul.mubr.msk.f32.vlgmr.msra.gmra.mrb[8].mxu0 %vm180_vm0, %v101_v8  ;;  %v51_v8 = vld [vmem:[%s5727_s1 + $0x100] sm:$0xff] }
  0x26   :  { %3566 = vmatmul.mubr.msk.f32.vlgmr.msra.gmra.mrb[8].mxu1 %vm180_vm0, %v109_v40  ;;  %3548 = vmatprep.mubr.msk.f32.mxu0 %vm180_vm0, %v102_v41  ;;  %v116_v15 = vmul.f32 %v4282_v7, %v51_v8  ;;  %v179_v40 = vld [vmem:[%s5725_s2 + $0xf8] sm:$0xff]  ;;  %v126_v41 = vmul.f32 %v4282_v7, %v61_v26 }
  0x27   :  { %3568 = vmatprep.mubr.msk.f32.mxu1 %vm180_vm0, %v110_v46  ;;  %3870 = vmatpush3.bf16.xpose.msk.msra.mxu0 %vm4266_vm1, %v4438_v63  ;;  %v113_v63 = vmul.f32 %v4282_v7, %v48_v57  ;;  %v3895_v46 = vpack.c.bf16 %v175_v32, %v174_v31  ;;  %v3907_v48 = vpack.c.bf16 %v179_v40, %v178_v39  ;;  %v1886_v39 = vld [vmem:[%s5728_s3 + $0x8] sm:$0xff] }
  0x28   :  { %3882 = vmatpush3.bf16.xpose.msk.msra.mxu1 %vm4266_vm1, %v4444_v4  ;;  %3873 = vmatprep.subr.msk.bf16.mxu0 %vm4266_vm1, %v3871_v50  ;;  %v177_v4 = vld [vmem:[%s5725_s2 + $0xe8] sm:$0xff]  ;;  %v3913_v42 = vpack.c.bf16 %v1886_v39, %v1885_v35 }
  0x29   :  { %3549 = vmatmul.mubr.msk.f32.gmra.mrb[10].mxu0 %vm180_vm0, %v103_v51  ;;  %3885 = vmatprep.subr.msk.bf16.mxu1 %vm4266_vm1, %v3883_v52  ;;  %v3901_v13 = vpack.c.bf16 %v177_v4, %v176_v3  ;;  %v56_v51 = vld [vmem:[%s5727_s1 + $0x128] sm:$0xff]  ;;  %v132_v3 = vmul.f32 %v4282_v7, %v67_v62 }
  0x2a   :  { %3569 = vmatmul.mubr.msk.f32.gmra.mrb[10].mxu1 %vm180_vm0, %v111_v53  ;;  %3551 = vmatprep.mubr.msk.f32.mxu0 %vm180_vm0, %v104_v54  ;;  %v64_v53 = vld [vmem:[%s5727_s1 + $0x168] sm:$0xff]  ;;  %v57_v54 = vld [vmem:[%s5727_s1 + $0x130] sm:$0xff] }
  0x2b   :  { %3571 = vmatprep.mubr.msk.f32.mxu1 %vm180_vm0, %v112_v56  ;;  %v121_v56 = vmul.f32 %v4282_v7, %v56_v51  ;;  %v129_v57 = vmul.f32 %v4282_v7, %v64_v53  ;;  %v122_v58 = vmul.f32 %v4282_v7, %v57_v54  ;;  %v1890_v53 = vld [vmem:[%s5728_s3 + $0x28] sm:$0xff] }
  0x2d   :  { %3552 = vmatmul.mubr.msk.f32.gmra.mrb[12].mxu0 %vm180_vm0, %v105_v60  ;;  %v130_v60 = vmul.f32 %v4282_v7, %v65_v55 }
  0x2e   :  { %3572 = vmatmul.mubr.msk.f32.gmra.mrb[12].mxu1 %vm180_vm0, %v113_v63  ;;  %3554 = vmatprep.mubr.msk.f32.mxu0 %vm180_vm0, %v106_v0  ;;  %v75_v63 = vld [vmem:[%s5727_s1 + $0x1c0] sm:$0xff]  ;;  %v123_v0 = vmul.f32 %v4282_v7, %v58_v59 }
  0x2f   :  { %3574 = vmatprep.mubr.msk.f32.mxu1 %vm180_vm0, %v114_v5  ;;  %3876 = vmatpush3.bf16.xpose.msk.msra.mxu0 %vm4266_vm1, %v3871_v50  ;;  %v120_v50 = vmul.f32 %v4282_v7, %v55_v43  ;;  %v140_v4 = vmul.f32 %v4282_v7, %v75_v63 }
  0x30   :  { %3888 = vmatpush3.bf16.xpose.msk.msra.mxu1 %vm4266_vm1, %v3883_v52  ;;  %3891 = vmatprep.subr.msk.bf16.mxu0 %vm4266_vm1, %v3889_v10  ;;  %v128_v52 = vmul.f32 %v4282_v7, %v63_v44 }
  0x31   :  { %3555 = vmatmul.mubr.msk.f32.gmra.mrb[14].mxu0 %vm180_vm0, %v107_v12  ;;  %3903 = vmatprep.subr.msk.bf16.mxu1 %vm4266_vm1, %v3901_v13 }
  0x32   :  { %3575 = vmatmul.mubr.msk.f32.gmra.mrb[14].mxu1 %vm180_vm0, %v115_v14  ;;  %3585 = vmatprep.mubr.msk.f32.mxu0 %vm180_vm0, %v116_v15 }
  0x33   :  { %3605 = vmatprep.mubr.msk.f32.mxu1 %vm180_vm0, %v124_v19 }
  0x36   :  { %3586 = vmatmul.mubr.msk.f32.vlgmr.msra.gmra.mrb[16].mxu0 %vm180_vm0, %v117_v27 }
  0x37   :  { %3606 = vmatmul.mubr.msk.f32.vlgmr.msra.gmra.mrb[16].mxu1 %vm180_vm0, %v125_v33  ;;  %3588 = vmatprep.mubr.msk.f32.mxu0 %vm180_vm0, %v118_v34 }
  0x38   :  { %3608 = vmatprep.mubr.msk.f32.mxu1 %vm180_vm0, %v126_v41  ;;  %3894 = vmatpush3.bf16.xpose.msk.msra.mxu0 %vm4266_vm1, %v3889_v10 }
  0x39   :  { %3906 = vmatpush3.bf16.xpose.msk.msra.mxu1 %vm4266_vm1, %v3901_v13  ;;  %3897 = vmatprep.subr.msk.bf16.mxu0 %vm4266_vm1, %v3895_v46 }
  0x3a   :  { %3589 = vmatmul.mubr.msk.f32.gmra.mrb[18].mxu0 %vm180_vm0, %v119_v47  ;;  %3909 = vmatprep.subr.msk.bf16.mxu1 %vm4266_vm1, %v3907_v48 }
  0x3b   :  { %3609 = vmatmul.mubr.msk.f32.gmra.mrb[18].mxu1 %vm180_vm0, %v127_v49  ;;  %3591 = vmatprep.mubr.msk.f32.mxu0 %vm180_vm0, %v120_v50  ;;  %v1888_v49 = vld [vmem:[%s5728_s3 + $0x18] sm:$0xff]  ;;  %v1889_v50 = vld [vmem:[%s5728_s3 + $0x20] sm:$0xff] }
  0x3c   :  { %3611 = vmatprep.mubr.msk.f32.mxu1 %vm180_vm0, %v128_v52  ;;  %v3921_v54 = vpack.c.bf16 %v1890_v53, %v1889_v50 }
  0x3e   :  { %3592 = vmatmul.mubr.msk.f32.gmra.mrb[20].mxu0 %vm180_vm0, %v121_v56 }
  0x3f   :  { %3612 = vmatmul.mubr.msk.f32.gmra.mrb[20].mxu1 %vm180_vm0, %v129_v57  ;;  %3594 = vmatprep.mubr.msk.f32.mxu0 %vm180_vm0, %v122_v58 }
  0x40   :  { %3614 = vmatprep.mubr.msk.f32.mxu1 %vm180_vm0, %v130_v60  ;;  %3900 = vmatpush3.bf16.xpose.msk.msra.mxu0 %vm4266_vm1, %v3895_v46  ;;  %v1891_v60 = vld [vmem:[%s5728_s3 + $0x30] sm:$0xff] }
  0x41   :  { %3912 = vmatpush3.bf16.xpose.msk.msra.mxu1 %vm4266_vm1, %v3907_v48  ;;  %3914 = vmatprep.subr.bf16.mxu0 %v3913_v42  ;;  %v1887_v48 = vld [vmem:[%s5728_s3 + $0x10] sm:$0xff] }
  0x42   :  { %3595 = vmatmul.mubr.msk.f32.gmra.mrb[22].mxu0 %vm180_vm0, %v123_v0  ;;  %v3917_v52 = vpack.c.bf16 %v1888_v49, %v1887_v48  ;;  %3922 = vmatprep.subr.bf16.mxu1 %v3921_v54  ;;  %v3925_v0 = vpack.c.bf16 %v1892_v61, %v1891_v60 }
  0x43   :  { %3615 = vmatmul.mubr.msk.f32.gmra.mrb[22].mxu1 %vm180_vm0, %v131_v1  ;;  %3625 = vmatprep.mubr.msk.f32.mxu0 %vm180_vm0, %v132_v3 }
  0x44   :  { %3645 = vmatprep.mubr.msk.f32.mxu1 %vm180_vm0, %v140_v4 }
  0x47   :  { %3626 = vmatmul.mubr.msk.f32.vlgmr.msra.gmra.mrb[24].mxu0 %vm180_vm0, %v4460_v11 }
  0x48   :  { %3646 = vmatmul.mubr.msk.f32.vlgmr.msra.gmra.mrb[24].mxu1 %vm180_vm0, %v4478_v16  ;;  %3628 = vmatprep.mubr.msk.f32.mxu0 %vm180_vm0, %v4481_v17 }
  0x49   :  { %3648 = vmatprep.mubr.msk.f32.mxu1 %vm180_vm0, %v4484_v18  ;;  %3916 = vmatpush3.bf16.msra.mxu0 %v3913_v42 }
  0x4a   :  { %3918 = vmatprep.subr.bf16.mxu0 %v3917_v52  ;;  %3924 = vmatpush3.bf16.msra.mxu1 %v3921_v54 }
  0x4b   :  { %3629 = vmatmul.mubr.msk.f32.gmra.mrb[26].mxu0 %vm180_vm0, %v4501_v22  ;;  %3926 = vmatprep.subr.bf16.mxu1 %v3925_v0 }
  0x4c   :  { %3649 = vmatmul.mubr.msk.f32.gmra.mrb[26].mxu1 %vm180_vm0, %v4504_v23  ;;  %3631 = vmatprep.mubr.msk.f32.mxu0 %vm180_vm0, %v4507_v24 }
  0x4d   :  { %3651 = vmatprep.mubr.msk.f32.mxu1 %vm180_vm0, %v4523_v28  ;;  %3920 = vmatpush3.bf16.msra.mxu0 %v3917_v52 }
  0x4e   :  { %3928 = vmatpush3.bf16.msra.mxu1 %v3925_v0 }
  0x4f   :  { %3632 = vmatmul.mubr.msk.f32.gmra.mrb[28].mxu0 %vm180_vm0, %v4526_v29 }
  0x50   :  { %3652 = vmatmul.mubr.msk.f32.gmra.mrb[28].mxu1 %vm180_vm0, %v4529_v30  ;;  %3634 = vmatprep.mubr.msk.f32.mxu0 %vm180_vm0, %v4549_v36 }
  0x51   :  { %3654 = vmatprep.mubr.msk.f32.mxu1 %vm180_vm0, %v4552_v37 }
  0x53   :  { %3635 = vmatmul.mubr.msk.f32.gmra.mrb[30].mxu0 %vm180_vm0, %v4555_v38 }
  0x54   :  { %3655 = vmatmul.mubr.msk.f32.gmra.mrb[30].mxu1 %vm180_vm0, %v4573_v45 }
  0xe7   :  { %v4799_v2 = vpop.f32.mrb[0].mxu0 }
  0xe8   :  { %v4801_v7 = vpop.f32.mrb[1].mxu0  ;;  %v1312_v11 = vsel %vm180_vm0, %v4799_v2, -inf  ;;  %v4805_v16 = vpop.f32.mrb[0].mxu1 }
  0xe9   :  { %1313 = vmax.xlane.f32.xlu1 %v1312_v11  ;;  %v1309_v17 = vsel %vm180_vm0, %v4801_v7, -inf  ;;  %v4809_v18 = vpop.f32.mrb[1].mxu1  ;;  %v1336_v22 = vsel %vm180_vm0, %v4805_v16, -inf }
  0xea   :  { %1310 = vmax.xlane.f32.xlu0 %v1309_v17  ;;  %v1333_v23 = vsel %vm180_vm0, %v4809_v18, -inf }
  0xeb   :  { %v4815_v24 = vpop.f32.mrb[2].mxu0 }
  0xec   :  { %v4817_v28 = vpop.f32.mrb[2].mxu1  ;;  %v4819_v29 = vpop.f32.mrb[3].mxu0  ;;  %v1318_v37 = vsel %vm180_vm0, %v4815_v24, -inf }
  0xed   :  { %1337 = vmax.xlane.f32.xlu1 %v1336_v22  ;;  %v4821_v30 = vpop.f32.mrb[3].mxu1  ;;  %v1342_v36 = vsel %vm180_vm0, %v4817_v28, -inf  ;;  %v1315_v13 = vsel %vm180_vm0, %v4819_v29, -inf }
  0xee   :  { %1334 = vmax.xlane.f32.xlu0 %v1333_v23  ;;  %v1339_v9 = vsel %vm180_vm0, %v4821_v30, -inf }
  0xef   :  { %v4827_v38 = vpop.f32.mrb[4].mxu0 }
  0xf0   :  { %v4829_v45 = vpop.f32.mrb[4].mxu1  ;;  %v4831_v5 = vpop.f32.mrb[5].mxu0  ;;  %v1324_v19 = vsel %vm180_vm0, %v4827_v38, -inf }
  0xf1   :  { %1343 = vmax.xlane.f32.xlu1 %v1342_v36  ;;  %v4833_v6 = vpop.f32.mrb[5].mxu1  ;;  %v1348_v15 = vsel %vm180_vm0, %v4829_v45, -inf  ;;  %v1321_v32 = vsel %vm180_vm0, %v4831_v5, -inf }
  0xf2   :  { %1319 = vmax.xlane.f32.xlu0 %v1318_v37  ;;  %v1345_v27 = vsel %vm180_vm0, %v4833_v6, -inf }
  0xf3   :  { %v4835_v8 = vpop.f32.mrb[6].mxu0 }
  0xf4   :  { %v4839_v10 = vpop.f32.mrb[6].mxu1  ;;  %v4841_v12 = vpop.f32.mrb[7].mxu0  ;;  %v1330_v43 = vsel %vm180_vm0, %v4835_v8, -inf }
  0xf5   :  { %1340 = vmax.xlane.f32.xlu1 %v1339_v9  ;;  %v4845_v14 = vpop.f32.mrb[7].mxu1  ;;  %v1354_v40 = vsel %vm180_vm0, %v4839_v10, -inf  ;;  %v1327_v57 = vsel %vm180_vm0, %v4841_v12, -inf }
  0xf6   :  { %1316 = vmax.xlane.f32.xlu0 %v1315_v13  ;;  %v1351_v55 = vsel %vm180_vm0, %v4845_v14, -inf }
  0xf8   :  { %v4851_v20 = vpop.f32.mrb[8].mxu0 }
  0xf9   :  { %1349 = vmax.xlane.f32.xlu1 %v1348_v15  ;;  %v4853_v21 = vpop.f32.mrb[8].mxu1  ;;  %v4855_v25 = vpop.f32.mrb[9].mxu0  ;;  %v1360_v1 = vsel %vm180_vm0, %v4851_v20, -inf }
  0xfa   :  { %1325 = vmax.xlane.f32.xlu0 %v1324_v19  ;;  %v4857_v26 = vpop.f32.mrb[9].mxu1  ;;  %v1384_v62 = vsel %vm180_vm0, %v4853_v21, -inf  ;;  %v1357_v23 = vsel %vm180_vm0, %v4855_v25, -inf }
  0xfb   :  { %v1381_v22 = vsel %vm180_vm0, %v4857_v26, -inf }
  0xfc   :  { %v4861_v31 = vpop.f32.mrb[10].mxu0 }
  0xfd   :  { %1346 = vmax.xlane.f32.xlu1 %v1345_v27  ;;  %v4865_v33 = vpop.f32.mrb[10].mxu1  ;;  %v4867_v34 = vpop.f32.mrb[11].mxu0  ;;  %v1366_v15 = vsel %vm180_vm0, %v4861_v31, -inf }
  0xfe   :  { %1322 = vmax.xlane.f32.xlu0 %v1321_v32  ;;  %v4877_v41 = vpop.f32.mrb[11].mxu1  ;;  %v1390_v37 = vsel %vm180_vm0, %v4865_v33, -inf  ;;  %v1363_v42 = vsel %vm180_vm0, %v4867_v34, -inf }
 0x100   :  { %v4881_v44 = vpop.f32.mrb[12].mxu0 }
 0x101   :  { %5748 = vst [vmem:[#allocation3_spill] sm:$0xff] %v4881_v44  ;;  %1355 = vmax.xlane.f32.xlu1 %v1354_v40  ;;  %v4883_v46 = vpop.f32.mrb[12].mxu1  ;;  %v4885_v47 = vpop.f32.mrb[13].mxu0  ;;  %v1387_v40 = vsel %vm180_vm0, %v4877_v41, -inf  ;;  %v1372_v52 = vsel %vm180_vm0, %v4881_v44, -inf }
 0x102   :  { %5749 = vst [vmem:[#allocation4_spill] sm:$0xff] %v4885_v47  ;;  %1331 = vmax.xlane.f32.xlu0 %v1330_v43  ;;  %v4896_v51 = vpop.f32.mrb[13].mxu1  ;;  %v1396_v48 = vsel %vm180_vm0, %v4883_v46, -inf }
 0x103   :  { %5750 = vst [vmem:[#allocation5_spill] sm:$0xff] %v4896_v51  ;;  %v1393_v60 = vsel %vm180_vm0, %v4896_v51, -inf }
 0x104   :  { %v4903_v56 = vpop.f32.mrb[14].mxu0 }
 0x105   :  { %5751 = vst [vmem:[#allocation6_spill] sm:$0xff] %v4903_v56  ;;  %1352 = vmax.xlane.f32.xlu1 %v1351_v55  ;;  %v4907_v58 = vpop.f32.mrb[14].mxu1  ;;  %v4909_v59 = vpop.f32.mrb[15].mxu0 }
 0x106   :  { %5752 = vst [vmem:[#allocation7_spill] sm:$0xff] %v4907_v58  ;;  %1328 = vmax.xlane.f32.xlu0 %v1327_v57  ;;  %v4919_v63 = vpop.f32.mrb[15].mxu1  ;;  %v1402_v0 = vsel %vm180_vm0, %v4907_v58, -inf }
 0x107   :  { %5753 = vst [vmem:[#allocation8_spill] sm:$0xff] %v4919_v63 }
 0x109   :  { %1385 = vmax.xlane.f32.xlu1 %v1384_v62  ;;  %v4923_v3 = vpop.f32.mrb[16].mxu0  ;;  %v1369_v62 = vsel %vm180_vm0, %v4885_v47, -inf }
 0x10a   :  { %5754 = vst [vmem:[#allocation9_spill] sm:$0xff] %v4923_v3  ;;  %1361 = vmax.xlane.f32.xlu0 %v1360_v1  ;;  %v4925_v4 = vpop.f32.mrb[16].mxu1  ;;  %v4927_v11 = vpop.f32.mrb[17].mxu0 }
 0x10b   :  { %5755 = vst [vmem:[#allocation10_spill] sm:$0xff] %v4925_v4  ;;  %v4929_v17 = vpop.f32.mrb[17].mxu1 }
 0x10d   :  { %1382 = vmax.xlane.f32.xlu1 %v1381_v22  ;;  %v4935_v36 = vpop.f32.mrb[18].mxu0  ;;  %v1378_v22 = vsel %vm180_vm0, %v4903_v56, -inf }
 0x10e   :  { %1358 = vmax.xlane.f32.xlu0 %v1357_v23  ;;  %v4939_v9 = vpop.f32.mrb[18].mxu1  ;;  %v4941_v13 = vpop.f32.mrb[19].mxu0 }
 0x10f   :  { %v4945_v19 = vpop.f32.mrb[19].mxu1 }
 0x111   :  { %1391 = vmax.xlane.f32.xlu1 %v1390_v37  ;;  %v4947_v27 = vpop.f32.mrb[20].mxu0 }
 0x112   :  { %1367 = vmax.xlane.f32.xlu0 %v1366_v15  ;;  %v4949_v32 = vpop.f32.mrb[20].mxu1  ;;  %v4951_v35 = vpop.f32.mrb[21].mxu0 }
 0x113   :  { %v4953_v39 = vpop.f32.mrb[21].mxu1 }
 0x115   :  { %1388 = vmax.xlane.f32.xlu1 %v1387_v40  ;;  %v4959_v43 = vpop.f32.mrb[22].mxu0  ;;  %v1897_v40 = vld [vmem:[%s5728_s3 + $0x60] sm:$0xff] }
 0x116   :  { %1364 = vmax.xlane.f32.xlu0 %v1363_v42  ;;  %v4963_v49 = vpop.f32.mrb[22].mxu1  ;;  %v4965_v50 = vpop.f32.mrb[23].mxu0  ;;  %v1898_v42 = vld [vmem:[%s5728_s3 + $0x68] sm:$0xff] }
 0x117   :  { %v4969_v53 = vpop.f32.mrb[23].mxu1 }
 0x119   :  { %1397 = vmax.xlane.f32.xlu1 %v1396_v48 }
 0x11a   :  { %1373 = vmax.xlane.f32.xlu0 %v1372_v52  ;;  %v4971_v54 = vpop.f32.mrb[24].mxu0  ;;  %v5003_v52 = vpack.c.bf16 %v1898_v42, %v1897_v40  ;;  %v1375_v40 = vsel %vm180_vm0, %v4909_v59, -inf  ;;  %v1432_v42 = vsel %vm180_vm0, %v4925_v4, -inf  ;;  %v1438_v4 = vsel %vm180_vm0, %v4939_v9, -inf }
 0x11b   :  { %v4973_v55 = vpop.f32.mrb[24].mxu1  ;;  %v4975_v57 = vpop.f32.mrb[25].mxu0 }
 0x11c   :  { %v4979_v61 = vpop.f32.mrb[25].mxu1  ;;  %3938 = vmatprep.subr.bf16.mxu1 %v5003_v52 }
 0x11d   :  { %1394 = vmax.xlane.f32.xlu1 %v1393_v60  ;;  %v1893_v60 = vld [vmem:[%s5728_s3 + $0x40] sm:$0xff] }
 0x11e   :  { %1370 = vmax.xlane.f32.xlu0 %v1369_v62  ;;  %v4985_v1 = vpop.f32.mrb[26].mxu0  ;;  %v1894_v62 = vld [vmem:[%s5728_s3 + $0x48] sm:$0xff] }
 0x11f   :  { %v4989_v23 = vpop.f32.mrb[26].mxu1  ;;  %v4991_v37 = vpop.f32.mrb[27].mxu0  ;;  %v5015_v58 = vpack.c.bf16 %v1894_v62, %v1893_v60  ;;  %v1408_v60 = vsel %vm180_vm0, %v4923_v3, -inf  ;;  %v1414_v3 = vsel %vm180_vm0, %v4935_v36, -inf }
 0x120   :  { %v4993_v15 = vpop.f32.mrb[27].mxu1 }
 0x121   :  { %1403 = vmax.xlane.f32.xlu1 %v1402_v0  ;;  %3930 = vmatprep.subr.bf16.mxu0 %v5015_v58 }
 0x122   :  { %1379 = vmax.xlane.f32.xlu0 %v1378_v22  ;;  %v5001_v48 = vpop.f32.mrb[28].mxu0  ;;  %v1399_v22 = vsel %vm180_vm0, %v4919_v63, -inf }
 0x123   :  { %5756 = vst [vmem:[#allocation11_spill] sm:$0xff] %v5001_v48  ;;  %v5011_v0 = vpop.f32.mrb[28].mxu1  ;;  %v5013_v56 = vpop.f32.mrb[29].mxu0 }
 0x124   :  { %5757 = vst [vmem:[#allocation12_spill] sm:$0xff] %v5011_v0  ;;  %5758 = vst [vmem:[#allocation13_spill] sm:$0xff] %v5013_v56  ;;  %v5019_v47 = vpop.f32.mrb[29].mxu1 }
 0x125   :  { %5759 = vst [vmem:[#allocation14_spill] sm:$0xff] %v5019_v47  ;;  %1400 = vmax.xlane.f32.xlu1 %v1399_v22  ;;  %v1429_v22 = vsel %vm180_vm0, %v4929_v17, -inf }
 0x126   :  { %1376 = vmax.xlane.f32.xlu0 %v1375_v40  ;;  %v5027_v51 = vpop.f32.mrb[30].mxu0  ;;  %v1405_v40 = vsel %vm180_vm0, %v4927_v11, -inf }
 0x127   :  { %5760 = vst [vmem:[#allocation15_spill] sm:$0xff] %v5027_v51  ;;  %v5031_v62 = vpop.f32.mrb[30].mxu1  ;;  %v5033_v63 = vpop.f32.mrb[31].mxu0 }
 0x128   :  { %5761 = vst [vmem:[#allocation16_spill] sm:$0xff] %v5031_v62  ;;  %5762 = vst [vmem:[#allocation17_spill] sm:$0xff] %v5033_v63  ;;  %v5035_v44 = vpop.f32.mrb[31].mxu1 }
 0x129   :  { %5763 = vst [vmem:[#allocation18_spill] sm:$0xff] %v5035_v44  ;;  %1433 = vmax.xlane.f32.xlu1 %v1432_v42  ;;  %v1435_v42 = vsel %vm180_vm0, %v4945_v19, -inf }
 0x12a   :  { %1409 = vmax.xlane.f32.xlu0 %v1408_v60  ;;  %v1411_v60 = vsel %vm180_vm0, %v4941_v13, -inf }
 0x12d   :  { %1430 = vmax.xlane.f32.xlu1 %v1429_v22  ;;  %v1444_v22 = vsel %vm180_vm0, %v4949_v32, -inf }
 0x12e   :  { %1406 = vmax.xlane.f32.xlu0 %v1405_v40  ;;  %v1420_v40 = vsel %vm180_vm0, %v4947_v27, -inf }
 0x131   :  { %1439 = vmax.xlane.f32.xlu1 %v1438_v4  ;;  %v1441_v4 = vsel %vm180_vm0, %v4953_v39, -inf }
 0x132   :  { %1415 = vmax.xlane.f32.xlu0 %v1414_v3  ;;  %v1417_v3 = vsel %vm180_vm0, %v4951_v35, -inf }
 0x135   :  { %1436 = vmax.xlane.f32.xlu1 %v1435_v42  ;;  %v1450_v42 = vsel %vm180_vm0, %v4963_v49, -inf }
 0x136   :  { %1412 = vmax.xlane.f32.xlu0 %v1411_v60  ;;  %v1426_v60 = vsel %vm180_vm0, %v4959_v43, -inf }
 0x139   :  { %1445 = vmax.xlane.f32.xlu1 %v1444_v22  ;;  %v1447_v22 = vsel %vm180_vm0, %v4969_v53, -inf }
 0x13a   :  { %1421 = vmax.xlane.f32.xlu0 %v1420_v40  ;;  %v1423_v40 = vsel %vm180_vm0, %v4965_v50, -inf }
 0x13d   :  { %1442 = vmax.xlane.f32.xlu1 %v1441_v4  ;;  %v1480_v4 = vsel %vm180_vm0, %v4973_v55, -inf }
 0x13e   :  { %1418 = vmax.xlane.f32.xlu0 %v1417_v3  ;;  %v1456_v3 = vsel %vm180_vm0, %v4971_v54, -inf }
 0x141   :  { %1451 = vmax.xlane.f32.xlu1 %v1450_v42  ;;  %v1477_v42 = vsel %vm180_vm0, %v4979_v61, -inf }
 0x142   :  { %1427 = vmax.xlane.f32.xlu0 %v1426_v60  ;;  %v1453_v60 = vsel %vm180_vm0, %v4975_v57, -inf }
 0x145   :  { %1448 = vmax.xlane.f32.xlu1 %v1447_v22  ;;  %v1486_v22 = vsel %vm180_vm0, %v4989_v23, -inf }
 0x146   :  { %1424 = vmax.xlane.f32.xlu0 %v1423_v40  ;;  %v1462_v40 = vsel %vm180_vm0, %v4985_v1, -inf }
 0x149   :  { %1481 = vmax.xlane.f32.xlu1 %v1480_v4  ;;  %v1483_v4 = vsel %vm180_vm0, %v4993_v15, -inf }
 0x14a   :  { %1457 = vmax.xlane.f32.xlu0 %v1456_v3  ;;  %v1459_v3 = vsel %vm180_vm0, %v4991_v37, -inf }
 0x14d   :  { %1478 = vmax.xlane.f32.xlu1 %v1477_v42  ;;  %v1492_v42 = vsel %vm180_vm0, %v5011_v0, -inf }
 0x14e   :  { %1454 = vmax.xlane.f32.xlu0 %v1453_v60  ;;  %v1468_v60 = vsel %vm180_vm0, %v5001_v48, -inf }
 0x151   :  { %1487 = vmax.xlane.f32.xlu1 %v1486_v22  ;;  %v1489_v22 = vsel %vm180_vm0, %v5019_v47, -inf }
 0x152   :  { %1463 = vmax.xlane.f32.xlu0 %v1462_v40  ;;  %v1465_v40 = vsel %vm180_vm0, %v5013_v56, -inf }
 0x155   :  { %1484 = vmax.xlane.f32.xlu1 %v1483_v4  ;;  %v1495_v4 = vsel %vm180_vm0, %v5035_v44, -inf }
 0x156   :  { %1460 = vmax.xlane.f32.xlu0 %v1459_v3  ;;  %v1471_v3 = vsel %vm180_vm0, %v5033_v63, -inf }
 0x159   :  { %1493 = vmax.xlane.f32.xlu1 %v1492_v42  ;;  %v1498_v42 = vsel %vm180_vm0, %v5031_v62, -inf }
 0x15a   :  { %1469 = vmax.xlane.f32.xlu0 %v1468_v60  ;;  %v1474_v60 = vsel %vm180_vm0, %v5027_v51, -inf }
 0x15d   :  { %1490 = vmax.xlane.f32.xlu1 %v1489_v22 }
 0x15e   :  { %1466 = vmax.xlane.f32.xlu0 %v1465_v40 }
 0x161   :  { %1496 = vmax.xlane.f32.xlu1 %v1495_v4 }
 0x162   :  { %1472 = vmax.xlane.f32.xlu0 %v1471_v3 }
 0x165   :  { %1499 = vmax.xlane.f32.xlu1 %v1498_v42 }
 0x166   :  { %1475 = vmax.xlane.f32.xlu0 %v1474_v60 }
 0x176   :  { %v1314_v22 = vpop.xlane.xlu1 %1313 }
 0x177   :  { %v1502_v56 = vsub.f32 %v4799_v2, %v1314_v22  ;;  %v1311_v40 = vpop.xlane.xlu0 %1310 }
 0x178   :  { %v1501_v47 = vsub.f32 %v4801_v7, %v1311_v40  ;;  %v1899_v40 = vld [vmem:[%s5728_s3 + $0x70] sm:$0xff] }
 0x179   :  { %v1567_v44 = vmul.f32 1.442695, %v1502_v56 }
 0x17a   :  { %v1565_v48 = vmul.f32 1.442695, %v1501_v47  ;;  %v1338_v0 = vpop.xlane.xlu1 %1337 }
 0x17b   :  { %3977 = vpow2.f32 %v1567_v44  ;;  %v1510_v4 = vsub.f32 %v4805_v16, %v1338_v0  ;;  %v1335_v3 = vpop.xlane.xlu0 %1334 }
 0x17c   :  { %3979 = vpow2.f32 %v1565_v48  ;;  %v1509_v42 = vsub.f32 %v4809_v18, %v1335_v3  ;;  %v1895_v18 = vld [vmem:[%s5728_s3 + $0x50] sm:$0xff]  ;;  %v1896_v48 = vld [vmem:[%s5728_s3 + $0x58] sm:$0xff] }
 0x17d   :  { %v1583_v62 = vmul.f32 1.442695, %v1510_v4  ;;  %v1900_v4 = vld [vmem:[%s5728_s3 + $0x78] sm:$0xff]  ;;  %v3933_v3 = vpack.c.bf16 %v1896_v48, %v1895_v18 }
 0x17e   :  { %v1581_v63 = vmul.f32 1.442695, %v1509_v42  ;;  %v1344_v51 = vpop.xlane.xlu1 %1343 }
 0x17f   :  { %3981 = vpow2.f32 %v1583_v62  ;;  %v1512_v60 = vsub.f32 %v4817_v28, %v1344_v51  ;;  %v1320_v2 = vpop.xlane.xlu0 %1319 }
 0x180   :  { %3983 = vpow2.f32 %v1581_v63  ;;  %v1504_v7 = vsub.f32 %v4815_v24, %v1320_v2  ;;  %v1901_v2 = vld [vmem:[%s5728_s3 + $0x80] sm:$0xff] }
 0x181   :  { %v1587_v56 = vmul.f32 1.442695, %v1512_v60 }
 0x182   :  { %v1571_v47 = vmul.f32 1.442695, %v1504_v7  ;;  %v1341_v22 = vpop.xlane.xlu1 %1340  ;;  %v1902_v7 = vld [vmem:[%s5728_s3 + $0x88] sm:$0xff] }
 0x183   :  { %v1511_v44 = vsub.f32 %v4821_v30, %v1341_v22  ;;  %v1317_v16 = vpop.xlane.xlu0 %1316 }
 0x184   :  { %3985 = vpow2.f32 %v1571_v47  ;;  %v1503_v28 = vsub.f32 %v4819_v29, %v1317_v16  ;;  %v3941_v47 = vpack.c.bf16 %v1900_v4, %v1899_v40 }
 0x185   :  { %v3978_v51 = vpop.eup %3977  ;;  %v1585_v63 = vmul.f32 1.442695, %v1511_v44  ;;  %3987 = vpow2.f32 %v1587_v56 }
 0x186   :  { %v3980_v24 = vpop.eup %3979  ;;  %v1569_v0 = vmul.f32 1.442695, %v1503_v28  ;;  %v1350_v62 = vpop.xlane.xlu1 %1349  ;;  %v1696_v30 = vsel %vm180_vm0, %v3978_v51, 0.0  ;;  %v5131_v28 = vpack.c.bf16 %v1902_v7, %v1901_v2 }
 0x187   :  { %3989 = vpow2.f32 %v1585_v63  ;;  %v1514_v29 = vsub.f32 %v4829_v45, %v1350_v62  ;;  %1697 = vadd.xlane.f32.xlu1 %v1696_v30  ;;  %3665 = vmatprep.mubr.msk.f32.mxu0 %vm180_vm0, %v3980_v24  ;;  %v1326_v42 = vpop.xlane.xlu0 %1325  ;;  %v1693_v60 = vsel %vm180_vm0, %v3980_v24, 0.0  ;;  %v1906_v24 = vld [vmem:[%s5728_s3 + $0xa8] sm:$0xff] }
 0x188   :  { %3991 = vpow2.f32 %v1569_v0  ;;  %v1506_v56 = vsub.f32 %v4827_v38, %v1326_v42  ;;  %3666 = vmatmul.mubr.msk.f32.vlgmr.msra.gmra.mrb[32].mxu0 %vm180_vm0, %v3978_v51  ;;  %1694 = vadd.xlane.f32.xlu0 %v1693_v60 }
 0x189   :  { %v3982_v45 = vpop.eup %3981  ;;  %3932 = vmatpush3.bf16.msra.mxu0 %v5015_v58  ;;  %v1591_v44 = vmul.f32 1.442695, %v1514_v29  ;;  %v1905_v58 = vld [vmem:[%s5728_s3 + $0xa0] sm:$0xff] }
 0x18a   :  { %v3984_v22 = vpop.eup %3983  ;;  %v1575_v16 = vmul.f32 1.442695, %v1506_v56  ;;  %v1347_v18 = vpop.xlane.xlu1 %1346  ;;  %v1720_v48 = vsel %vm180_vm0, %v3982_v45, 0.0  ;;  %3934 = vmatprep.subr.bf16.mxu0 %v3933_v3  ;;  %v5145_v4 = vpack.c.bf16 %v1906_v24, %v1905_v58 }
 0x18b   :  { %v1513_v63 = vsub.f32 %v4833_v6, %v1347_v18  ;;  %1721 = vadd.xlane.f32.xlu1 %v1720_v48  ;;  %3685 = vmatprep.mubr.msk.f32.mxu1 %vm180_vm0, %v3984_v22  ;;  %v1323_v38 = vpop.xlane.xlu0 %1322  ;;  %v1717_v51 = vsel %vm180_vm0, %v3984_v22, 0.0 }
 0x18c   :  { %3993 = vpow2.f32 %v1575_v16  ;;  %v1505_v0 = vsub.f32 %v4831_v5, %v1323_v38  ;;  %3686 = vmatmul.mubr.msk.f32.vlgmr.msra.gmra.mrb[32].mxu1 %vm180_vm0, %v3982_v45  ;;  %1718 = vadd.xlane.f32.xlu0 %v1717_v51 }
 0x18d   :  { %v1589_v6 = vmul.f32 1.442695, %v1513_v63  ;;  %3940 = vmatpush3.bf16.msra.mxu1 %v5003_v52  ;;  %3936 = vmatpush3.bf16.msra.mxu0 %v3933_v3  ;;  %3995 = vpow2.f32 %v1591_v44 }
 0x18e   :  { %v3986_v62 = vpop.eup %3985  ;;  %v1573_v30 = vmul.f32 1.442695, %v1505_v0  ;;  %v1356_v40 = vpop.xlane.xlu1 %1355  ;;  %3942 = vmatprep.subr.bf16.mxu1 %v3941_v47  ;;  %3946 = vmatprep.subr.bf16.mxu0 %v5131_v28 }
 0x18f   :  { %3997 = vpow2.f32 %v1589_v6  ;;  %v1516_v29 = vsub.f32 %v4839_v10, %v1356_v40  ;;  %v1332_v5 = vpop.xlane.xlu0 %1331  ;;  %v1702_v42 = vsel %vm180_vm0, %v3986_v62, 0.0  ;;  %v3988_v60 = vpop.eup %3987 }
 0x190   :  { %3999 = vpow2.f32 %v1573_v30  ;;  %v1508_v52 = vsub.f32 %v4835_v8, %v1332_v5  ;;  %1703 = vadd.xlane.f32.xlu1 %v1702_v42  ;;  %v1726_v8 = vsel %vm180_vm0, %v3988_v60, 0.0 }
 0x191   :  { %v3990_v3 = vpop.eup %3989  ;;  %3944 = vmatpush3.bf16.msra.mxu1 %v3941_v47  ;;  %v1595_v7 = vmul.f32 1.442695, %v1516_v29 }
 0x192   :  { %v3992_v2 = vpop.eup %3991  ;;  %v1579_v56 = vmul.f32 1.442695, %v1508_v52  ;;  %v1353_v45 = vpop.xlane.xlu1 %1352  ;;  %3688 = vmatprep.mubr.msk.f32.mxu1 %vm180_vm0, %v3990_v3  ;;  %3954 = vmatprep.subr.bf16.mxu1 %v5145_v4 }
 0x193   :  { %v1515_v10 = vsub.f32 %v4845_v14, %v1353_v45  ;;  %3668 = vmatprep.mubr.msk.f32.mxu0 %vm180_vm0, %v3992_v2  ;;  %3689 = vmatmul.mubr.msk.f32.gmra.mrb[34].mxu1 %vm180_vm0, %v3988_v60  ;;  %v1329_v22 = vpop.xlane.xlu0 %1328  ;;  %v1699_v44 = vsel %vm180_vm0, %v3992_v2, 0.0 }
 0x194   :  { %4001 = vpow2.f32 %v1579_v56  ;;  %v1507_v47 = vsub.f32 %v4841_v12, %v1329_v22  ;;  %1727 = vadd.xlane.f32.xlu1 %v1726_v8  ;;  %3669 = vmatmul.mubr.msk.f32.gmra.mrb[34].mxu0 %vm180_vm0, %v3986_v62  ;;  %v1723_v12 = vsel %vm180_vm0, %v3990_v3, 0.0 }
 0x195   :  { %v1593_v16 = vmul.f32 1.442695, %v1515_v10  ;;  %1700 = vadd.xlane.f32.xlu0 %v1699_v44  ;;  %4003 = vpow2.f32 %v1595_v7 }
 0x196   :  { %v3994_v18 = vpop.eup %3993  ;;  %v1577_v14 = vmul.f32 1.442695, %v1507_v47  ;;  %v1386_v48 = vpop.xlane.xlu1 %1385 }
 0x197   :  { %4005 = vpow2.f32 %v1593_v16  ;;  %v1526_v63 = vsub.f32 %v4853_v21, %v1386_v48  ;;  %v1362_v38 = vpop.xlane.xlu0 %1361  ;;  %v1708_v51 = vsel %vm180_vm0, %v3994_v18, 0.0  ;;  %v3996_v58 = vpop.eup %3995 }
 0x198   :  { %4007 = vpow2.f32 %v1577_v14  ;;  %v1518_v24 = vsub.f32 %v4851_v20, %v1362_v38  ;;  %1709 = vadd.xlane.f32.xlu1 %v1708_v51  ;;  %v1732_v20 = vsel %vm180_vm0, %v3996_v58, 0.0 }
 0x199   :  { %v3998_v0 = vpop.eup %3997  ;;  %1724 = vadd.xlane.f32.xlu0 %v1723_v12  ;;  %v1615_v62 = vmul.f32 1.442695, %v1526_v63 }
 0x19a   :  { %v4000_v6 = vpop.eup %3999  ;;  %v1599_v30 = vmul.f32 1.442695, %v1518_v24  ;;  %v1383_v40 = vpop.xlane.xlu1 %1382  ;;  %3691 = vmatprep.mubr.msk.f32.mxu1 %vm180_vm0, %v3998_v0 }
 0x19b   :  { %v1525_v21 = vsub.f32 %v4857_v26, %v1383_v40  ;;  %3671 = vmatprep.mubr.msk.f32.mxu0 %vm180_vm0, %v4000_v6  ;;  %3692 = vmatmul.mubr.msk.f32.gmra.mrb[36].mxu1 %vm180_vm0, %v3996_v58  ;;  %v1359_v29 = vpop.xlane.xlu0 %1358  ;;  %v1705_v5 = vsel %vm180_vm0, %v4000_v6, 0.0 }
 0x19c   :  { %4009 = vpow2.f32 %v1599_v30  ;;  %v1517_v42 = vsub.f32 %v4855_v25, %v1359_v29  ;;  %1733 = vadd.xlane.f32.xlu1 %v1732_v20  ;;  %3672 = vmatmul.mubr.msk.f32.gmra.mrb[36].mxu0 %vm180_vm0, %v3994_v18  ;;  %v1729_v25 = vsel %vm180_vm0, %v3998_v0, 0.0  ;;  %v1907_v0 = vld [vmem:[%s5728_s3 + $0xb0] sm:$0xff] }
 0x19d   :  { %v1613_v60 = vmul.f32 1.442695, %v1525_v21  ;;  %1706 = vadd.xlane.f32.xlu0 %v1705_v5  ;;  %4011 = vpow2.f32 %v1615_v62  ;;  %v5764_v62 = vld [vmem:[#allocation3_spill] sm:$0xff]  ;;  %v1904_v21 = vld [vmem:[%s5728_s3 + $0x98] sm:$0xff] }
 0x19e   :  { %v4002_v52 = vpop.eup %4001  ;;  %v1597_v26 = vmul.f32 1.442695, %v1517_v42  ;;  %v1392_v3 = vpop.xlane.xlu1 %1391 }
 0x19f   :  { %4013 = vpow2.f32 %v1613_v60  ;;  %v1528_v2 = vsub.f32 %v4865_v33, %v1392_v3  ;;  %v1368_v7 = vpop.xlane.xlu0 %1367  ;;  %v1714_v56 = vsel %vm180_vm0, %v4002_v52, 0.0  ;;  %v4004_v45 = vpop.eup %4003 }
 0x1a0   :  { %4015 = vpow2.f32 %v1597_v26  ;;  %v1520_v10 = vsub.f32 %v4861_v31, %v1368_v7  ;;  %1715 = vadd.xlane.f32.xlu1 %v1714_v56  ;;  %v1738_v31 = vsel %vm180_vm0, %v4004_v45, 0.0  ;;  %v5765_v26 = vld [vmem:[#allocation5_spill] sm:$0xff] }
 0x1a1   :  { %v4006_v22 = vpop.eup %4005  ;;  %1730 = vadd.xlane.f32.xlu0 %v1729_v25  ;;  %v1619_v44 = vmul.f32 1.442695, %v1528_v2 }
 0x1a2   :  { %v4008_v8 = vpop.eup %4007  ;;  %v1603_v47 = vmul.f32 1.442695, %v1520_v10  ;;  %v1389_v16 = vpop.xlane.xlu1 %1388  ;;  %3694 = vmatprep.mubr.msk.f32.mxu1 %vm180_vm0, %v4006_v22  ;;  %v1735_v40 = vsel %vm180_vm0, %v4006_v22, 0.0  ;;  %v5766_v10 = vld [vmem:[#allocation4_spill] sm:$0xff] }
 0x1a3   :  { %v1527_v33 = vsub.f32 %v4877_v41, %v1389_v16  ;;  %3674 = vmatprep.mubr.msk.f32.mxu0 %vm180_vm0, %v4008_v8  ;;  %3695 = vmatmul.mubr.msk.f32.gmra.mrb[38].mxu1 %vm180_vm0, %v4004_v45  ;;  %v1365_v18 = vpop.xlane.xlu0 %1364  ;;  %v1711_v14 = vsel %vm180_vm0, %v4008_v8, 0.0  ;;  %v1913_v16 = vld [vmem:[%s5728_s3 + $0xe0] sm:$0xff] }
 0x1a4   :  { %4017 = vpow2.f32 %v1603_v47  ;;  %v1519_v48 = vsub.f32 %v4867_v34, %v1365_v18  ;;  %1739 = vadd.xlane.f32.xlu1 %v1738_v31  ;;  %3675 = vmatmul.mubr.msk.f32.gmra.mrb[38].mxu0 %vm180_vm0, %v4002_v52  ;;  %v1908_v34 = vld [vmem:[%s5728_s3 + $0xb8] sm:$0xff]  ;;  %v5767_v18 = vld [vmem:[#allocation7_spill] sm:$0xff] }
 0x1a5   :  { %v1617_v63 = vmul.f32 1.442695, %v1527_v33  ;;  %1712 = vadd.xlane.f32.xlu0 %v1711_v14  ;;  %4019 = vpow2.f32 %v1619_v44  ;;  %v3957_v52 = vpack.c.bf16 %v1908_v34, %v1907_v0  ;;  %v1914_v33 = vld [vmem:[%s5728_s3 + $0xe8] sm:$0xff] }
 0x1a6   :  { %v4010_v38 = vpop.eup %4009  ;;  %v1601_v41 = vmul.f32 1.442695, %v1519_v48  ;;  %v1398_v51 = vpop.xlane.xlu1 %1397  ;;  %v1910_v48 = vld [vmem:[%s5728_s3 + $0xc8] sm:$0xff] }
 0x1a7   :  { %4021 = vpow2.f32 %v1617_v63  ;;  %v1530_v58 = vsub.f32 %v4883_v46, %v1398_v51  ;;  %v1374_v24 = vpop.xlane.xlu0 %1373  ;;  %v1744_v12 = vsel %vm180_vm0, %v4010_v38, 0.0  ;;  %v4012_v6 = vpop.eup %4011  ;;  %v1903_v46 = vld [vmem:[%s5728_s3 + $0x90] sm:$0xff] }
 0x1a8   :  { %4023 = vpow2.f32 %v1601_v41  ;;  %v1522_v30 = vsub.f32 %v5764_v62, %v1374_v24  ;;  %1745 = vadd.xlane.f32.xlu1 %v1744_v12  ;;  %v1768_v7 = vsel %vm180_vm0, %v4012_v6, 0.0  ;;  %v3949_v45 = vpack.c.bf16 %v1904_v21, %v1903_v46 }
 0x1a9   :  { %v4014_v29 = vpop.eup %4013  ;;  %1736 = vadd.xlane.f32.xlu0 %v1735_v40  ;;  %v1623_v5 = vmul.f32 1.442695, %v1530_v58  ;;  %v5226_v24 = vpack.c.bf16 %v1914_v33, %v1913_v16 }
 0x1aa   :  { %v4016_v20 = vpop.eup %4015  ;;  %v1607_v42 = vmul.f32 1.442695, %v1522_v30  ;;  %v1395_v60 = vpop.xlane.xlu1 %1394  ;;  %3725 = vmatprep.mubr.msk.f32.mxu1 %vm180_vm0, %v4014_v29  ;;  %v1765_v51 = vsel %vm180_vm0, %v4014_v29, 0.0  ;;  %v5769_v30 = vld [vmem:[#allocation8_spill] sm:$0xff] }
 0x1ab   :  { %v1529_v3 = vsub.f32 %v5765_v26, %v1395_v60  ;;  %3705 = vmatprep.mubr.msk.f32.mxu0 %vm180_vm0, %v4016_v20  ;;  %3726 = vmatmul.mubr.msk.f32.vlgmr.msra.gmra.mrb[40].mxu1 %vm180_vm0, %v4012_v6  ;;  %v1371_v2 = vpop.xlane.xlu0 %1370  ;;  %v1741_v56 = vsel %vm180_vm0, %v4016_v20, 0.0  ;;  %v5770_v26 = vld [vmem:[#allocation10_spill] sm:$0xff] }
 0x1ac   :  { %4025 = vpow2.f32 %v1607_v42  ;;  %v1521_v25 = vsub.f32 %v5766_v10, %v1371_v2  ;;  %1769 = vadd.xlane.f32.xlu1 %v1768_v7  ;;  %3706 = vmatmul.mubr.msk.f32.vlgmr.msra.gmra.mrb[40].mxu0 %vm180_vm0, %v4010_v38  ;;  %v5768_v38 = vld [vmem:[#allocation6_spill] sm:$0xff] }
 0x1ad   :  { %v1621_v22 = vmul.f32 1.442695, %v1529_v3  ;;  %1742 = vadd.xlane.f32.xlu0 %v1741_v56  ;;  %3956 = vmatpush3.bf16.msra.mxu1 %v5145_v4  ;;  %4027 = vpow2.f32 %v1623_v5  ;;  %v5771_v56 = vld [vmem:[#allocation9_spill] sm:$0xff] }
 0x1ae   :  { %v4018_v8 = vpop.eup %4017  ;;  %v1605_v44 = vmul.f32 1.442695, %v1521_v25  ;;  %v1404_v47 = vpop.xlane.xlu1 %1403  ;;  %3948 = vmatpush3.bf16.msra.mxu0 %v5131_v28  ;;  %3958 = vmatprep.subr.bf16.mxu1 %v3957_v52  ;;  %v1909_v28 = vld [vmem:[%s5728_s3 + $0xc0] sm:$0xff] }
 0x1af   :  { %4029 = vpow2.f32 %v1621_v22  ;;  %v1532_v31 = vsub.f32 %v5767_v18, %v1404_v47  ;;  %v1380_v14 = vpop.xlane.xlu0 %1379  ;;  %v1750_v4 = vsel %vm180_vm0, %v4018_v8, 0.0  ;;  %3950 = vmatprep.subr.bf16.mxu0 %v3949_v45  ;;  %v4020_v63 = vpop.eup %4019  ;;  %v5229_v62 = vpack.c.bf16 %v1910_v48, %v1909_v28 }
 0x1b0   :  { %4031 = vpow2.f32 %v1605_v44  ;;  %v1524_v41 = vsub.f32 %v5768_v38, %v1380_v14  ;;  %1751 = vadd.xlane.f32.xlu1 %v1750_v4  ;;  %v1774_v21 = vsel %vm180_vm0, %v4020_v63, 0.0 }
 0x1b1   :  { %v4022_v58 = vpop.eup %4021  ;;  %1766 = vadd.xlane.f32.xlu0 %v1765_v51  ;;  %3960 = vmatpush3.bf16.msra.mxu1 %v3957_v52  ;;  %v1627_v0 = vmul.f32 1.442695, %v1532_v31 }
 0x1b2   :  { %v4024_v12 = vpop.eup %4023  ;;  %v1611_v34 = vmul.f32 1.442695, %v1524_v41  ;;  %v1401_v6 = vpop.xlane.xlu1 %1400  ;;  %3728 = vmatprep.mubr.msk.f32.mxu1 %vm180_vm0, %v4022_v58  ;;  %3952 = vmatpush3.bf16.msra.mxu0 %v3949_v45  ;;  %v1771_v10 = vsel %vm180_vm0, %v4022_v58, 0.0 }
 0x1b3   :  { %v1531_v40 = vsub.f32 %v5769_v30, %v1401_v6  ;;  %3708 = vmatprep.mubr.msk.f32.mxu0 %vm180_vm0, %v4024_v12  ;;  %3729 = vmatmul.mubr.msk.f32.gmra.mrb[42].mxu1 %vm180_vm0, %v4020_v63  ;;  %v1377_v46 = vpop.xlane.xlu0 %1376  ;;  %v1747_v29 = vsel %vm180_vm0, %v4024_v12, 0.0 }
 0x1b4   :  { %4033 = vpow2.f32 %v1611_v34  ;;  %v1523_v20 = vsub.f32 %v4909_v59, %v1377_v46  ;;  %1775 = vadd.xlane.f32.xlu1 %v1774_v21  ;;  %3709 = vmatmul.mubr.msk.f32.gmra.mrb[42].mxu0 %vm180_vm0, %v4018_v8 }
 0x1b5   :  { %v1625_v5 = vmul.f32 1.442695, %v1531_v40  ;;  %1748 = vadd.xlane.f32.xlu0 %v1747_v29  ;;  %3970 = vmatprep.subr.bf16.mxu1 %v5226_v24  ;;  %4035 = vpow2.f32 %v1627_v0 }
 0x1b6   :  { %v4026_v42 = vpop.eup %4025  ;;  %v1609_v60 = vmul.f32 1.442695, %v1523_v20  ;;  %v1434_v52 = vpop.xlane.xlu1 %1433  ;;  %3962 = vmatprep.subr.bf16.mxu0 %v5229_v62 }
 0x1b7   :  { %4037 = vpow2.f32 %v1625_v5  ;;  %v1542_v3 = vsub.f32 %v5770_v26, %v1434_v52  ;;  %v1410_v2 = vpop.xlane.xlu0 %1409  ;;  %v1756_v7 = vsel %vm180_vm0, %v4026_v42, 0.0  ;;  %v4028_v59 = vpop.eup %4027  ;;  %v1915_v26 = vld [vmem:[%s5728_s3 + $0xf0] sm:$0xff] }
 0x1b8   :  { %4039 = vpow2.f32 %v1609_v60  ;;  %v1534_v45 = vsub.f32 %v5771_v56, %v1410_v2  ;;  %1757 = vadd.xlane.f32.xlu1 %v1756_v7  ;;  %v1780_v18 = vsel %vm180_vm0, %v4028_v59, 0.0 }
 0x1b9   :  { %v4030_v25 = vpop.eup %4029  ;;  %1772 = vadd.xlane.f32.xlu0 %v1771_v10  ;;  %v1647_v8 = vmul.f32 1.442695, %v1542_v3 }
 0x1ba   :  { %v4032_v22 = vpop.eup %4031  ;;  %v1631_v44 = vmul.f32 1.442695, %v1534_v45  ;;  %v1431_v47 = vpop.xlane.xlu1 %1430  ;;  %3731 = vmatprep.mubr.msk.f32.mxu1 %vm180_vm0, %v4030_v25 }
 0x1bb   :  { %v1541_v16 = vsub.f32 %v4929_v17, %v1431_v47  ;;  %3711 = vmatprep.mubr.msk.f32.mxu0 %vm180_vm0, %v4032_v22  ;;  %3732 = vmatmul.mubr.msk.f32.gmra.mrb[44].mxu1 %vm180_vm0, %v4028_v59  ;;  %v1407_v33 = vpop.xlane.xlu0 %1406  ;;  %v1753_v31 = vsel %vm180_vm0, %v4032_v22, 0.0  ;;  %v1912_v59 = vld [vmem:[%s5728_s3 + $0xd8] sm:$0xff] }
 0x1bc   :  { %4041 = vpow2.f32 %v1631_v44  ;;  %v1533_v14 = vsub.f32 %v4927_v11, %v1407_v33  ;;  %1781 = vadd.xlane.f32.xlu1 %v1780_v18  ;;  %3712 = vmatmul.mubr.msk.f32.gmra.mrb[44].mxu0 %vm180_vm0, %v4026_v42  ;;  %v1777_v11 = vsel %vm180_vm0, %v4030_v25, 0.0 }
 0x1bd   :  { %v1645_v4 = vmul.f32 1.442695, %v1541_v16  ;;  %1754 = vadd.xlane.f32.xlu0 %v1753_v31  ;;  %4043 = vpow2.f32 %v1647_v8 }
 0x1be   :  { %v4034_v28 = vpop.eup %4033  ;;  %v1629_v17 = vmul.f32 1.442695, %v1533_v14  ;;  %v1440_v48 = vpop.xlane.xlu1 %1439 }
 0x1bf   :  { %4045 = vpow2.f32 %v1645_v4  ;;  %v1544_v63 = vsub.f32 %v4939_v9, %v1440_v48  ;;  %v1416_v38 = vpop.xlane.xlu0 %1415  ;;  %v1762_v41 = vsel %vm180_vm0, %v4034_v28, 0.0  ;;  %v4036_v51 = vpop.eup %4035 }
 0x1c0   :  { %4047 = vpow2.f32 %v1629_v17  ;;  %v1536_v58 = vsub.f32 %v4935_v36, %v1416_v38  ;;  %1763 = vadd.xlane.f32.xlu1 %v1762_v41  ;;  %v1786_v36 = vsel %vm180_vm0, %v4036_v51, 0.0 }
 0x1c1   :  { %v4038_v12 = vpop.eup %4037  ;;  %1778 = vadd.xlane.f32.xlu0 %v1777_v11  ;;  %v1651_v34 = vmul.f32 1.442695, %v1544_v63 }
 0x1c2   :  { %v4040_v0 = vpop.eup %4039  ;;  %v1635_v6 = vmul.f32 1.442695, %v1536_v58  ;;  %v1437_v30 = vpop.xlane.xlu1 %1436  ;;  %3734 = vmatprep.mubr.msk.f32.mxu1 %vm180_vm0, %v4038_v12  ;;  %v1783_v7 = vsel %vm180_vm0, %v4038_v12, 0.0 }
 0x1c3   :  { %v1543_v9 = vsub.f32 %v4945_v19, %v1437_v30  ;;  %3714 = vmatprep.mubr.msk.f32.mxu0 %vm180_vm0, %v4040_v0  ;;  %3735 = vmatmul.mubr.msk.f32.gmra.mrb[46].mxu1 %vm180_vm0, %v4036_v51  ;;  %v1413_v40 = vpop.xlane.xlu0 %1412  ;;  %v1759_v46 = vsel %vm180_vm0, %v4040_v0, 0.0 }
 0x1c4   :  { %4049 = vpow2.f32 %v1635_v6  ;;  %v1535_v21 = vsub.f32 %v4941_v13, %v1413_v40  ;;  %1787 = vadd.xlane.f32.xlu1 %v1786_v36  ;;  %3715 = vmatmul.mubr.msk.f32.gmra.mrb[46].mxu0 %vm180_vm0, %v4034_v28  ;;  %v1916_v13 = vld [vmem:[%s5728_s3 + $0xf8] sm:$0xff] }
 0x1c5   :  { %v1649_v29 = vmul.f32 1.442695, %v1543_v9  ;;  %1760 = vadd.xlane.f32.xlu0 %v1759_v46  ;;  %4051 = vpow2.f32 %v1651_v34 }
 0x1c6   :  { %v4042_v20 = vpop.eup %4041  ;;  %v1633_v19 = vmul.f32 1.442695, %v1535_v21  ;;  %v1446_v5 = vpop.xlane.xlu1 %1445 }
 0x1c7   :  { %4053 = vpow2.f32 %v1649_v29  ;;  %v1546_v42 = vsub.f32 %v4949_v32, %v1446_v5  ;;  %v1422_v60 = vpop.xlane.xlu0 %1421  ;;  %v1792_v52 = vsel %vm180_vm0, %v4042_v20, 0.0  ;;  %v4044_v3 = vpop.eup %4043  ;;  %v1911_v32 = vld [vmem:[%s5728_s3 + $0xd0] sm:$0xff] }
 0x1c8   :  { %4055 = vpow2.f32 %v1633_v19  ;;  %v1538_v2 = vsub.f32 %v4947_v27, %v1422_v60  ;;  %1793 = vadd.xlane.f32.xlu1 %v1792_v52  ;;  %v3973_v27 = vpack.c.bf16 %v1916_v13, %v1915_v26  ;;  %v1816_v47 = vsel %vm180_vm0, %v4044_v3, 0.0 }
 0x1c9   :  { %v4046_v56 = vpop.eup %4045  ;;  %1784 = vadd.xlane.f32.xlu0 %v1783_v7  ;;  %v1655_v10 = vmul.f32 1.442695, %v1546_v42  ;;  %v3965_v33 = vpack.c.bf16 %v1912_v59, %v1911_v32 }
 0x1ca   :  { %v4048_v45 = vpop.eup %4047  ;;  %v1639_v25 = vmul.f32 1.442695, %v1538_v2  ;;  %v1443_v22 = vpop.xlane.xlu1 %1442  ;;  %3765 = vmatprep.mubr.msk.f32.mxu1 %vm180_vm0, %v4046_v56 }
 0x1cb   :  { %v1545_v8 = vsub.f32 %v4953_v39, %v1443_v22  ;;  %3745 = vmatprep.mubr.msk.f32.mxu0 %vm180_vm0, %v4048_v45  ;;  %3766 = vmatmul.mubr.msk.f32.vlgmr.msra.gmra.mrb[48].mxu1 %vm180_vm0, %v4044_v3  ;;  %v1419_v44 = vpop.xlane.xlu0 %1418  ;;  %v1789_v16 = vsel %vm180_vm0, %v4048_v45, 0.0 }
 0x1cc   :  { %4057 = vpow2.f32 %v1639_v25  ;;  %v1537_v18 = vsub.f32 %v4951_v35, %v1419_v44  ;;  %1817 = vadd.xlane.f32.xlu1 %v1816_v47  ;;  %3746 = vmatmul.mubr.msk.f32.vlgmr.msra.gmra.mrb[48].mxu0 %vm180_vm0, %v4042_v20 }
 0x1cd   :  { %v1653_v31 = vmul.f32 1.442695, %v1545_v8  ;;  %1790 = vadd.xlane.f32.xlu0 %v1789_v16  ;;  %3972 = vmatpush3.bf16.msra.mxu1 %v5226_v24  ;;  %4059 = vpow2.f32 %v1655_v10  ;;  %v1813_v24 = vsel %vm180_vm0, %v4046_v56, 0.0 }
 0x1ce   :  { %v4050_v39 = vpop.eup %4049  ;;  %v1637_v14 = vmul.f32 1.442695, %v1537_v18  ;;  %v1452_v4 = vpop.xlane.xlu1 %1451  ;;  %3964 = vmatpush3.bf16.msra.mxu0 %v5229_v62  ;;  %3974 = vmatprep.subr.bf16.mxu1 %v3973_v27 }
 0x1cf   :  { %4061 = vpow2.f32 %v1653_v31  ;;  %v1548_v28 = vsub.f32 %v4963_v49, %v1452_v4  ;;  %v1428_v17 = vpop.xlane.xlu0 %1427  ;;  %v1798_v35 = vsel %vm180_vm0, %v4050_v39, 0.0  ;;  %3966 = vmatprep.subr.bf16.mxu0 %v3965_v33  ;;  %v4052_v48 = vpop.eup %4051 }
 0x1d0   :  { %4063 = vpow2.f32 %v1637_v14  ;;  %v1540_v63 = vsub.f32 %v4959_v43, %v1428_v17  ;;  %1799 = vadd.xlane.f32.xlu1 %v1798_v35  ;;  %v1822_v11 = vsel %vm180_vm0, %v4052_v48, 0.0  ;;  %v5773_v35 = vld [vmem:[#allocation11_spill] sm:$0xff] }
 0x1d1   :  { %v4054_v38 = vpop.eup %4053  ;;  %1814 = vadd.xlane.f32.xlu0 %v1813_v24  ;;  %3976 = vmatpush3.bf16.msra.mxu1 %v3973_v27  ;;  %v1659_v62 = vmul.f32 1.442695, %v1548_v28 }
 0x1d2   :  { %v4056_v41 = vpop.eup %4055  ;;  %v1643_v51 = vmul.f32 1.442695, %v1540_v63  ;;  %v1449_v58 = vpop.xlane.xlu1 %1448  ;;  %3768 = vmatprep.mubr.msk.f32.mxu1 %vm180_vm0, %v4054_v38  ;;  %3968 = vmatpush3.bf16.msra.mxu0 %v3965_v33 }
 0x1d3   :  { %v1547_v49 = vsub.f32 %v4969_v53, %v1449_v58  ;;  %3748 = vmatprep.mubr.msk.f32.mxu0 %vm180_vm0, %v4056_v41  ;;  %3769 = vmatmul.mubr.msk.f32.gmra.mrb[50].mxu1 %vm180_vm0, %v4052_v48  ;;  %v1425_v43 = vpop.xlane.xlu0 %1424  ;;  %v1795_v12 = vsel %vm180_vm0, %v4056_v41, 0.0 }
 0x1d4   :  { %4065 = vpow2.f32 %v1643_v51  ;;  %v1539_v0 = vsub.f32 %v4965_v50, %v1425_v43  ;;  %1823 = vadd.xlane.f32.xlu1 %v1822_v11  ;;  %3749 = vmatmul.mubr.msk.f32.gmra.mrb[50].mxu0 %vm180_vm0, %v4050_v39  ;;  %v1819_v50 = vsel %vm180_vm0, %v4054_v38, 0.0  ;;  %v5772_v39 = vld [vmem:[#allocation12_spill] sm:$0xff]  ;;  %v5774_v51 = vld [vmem:[#allocation14_spill] sm:$0xff] }
 0x1d5   :  { %v1657_v34 = vmul.f32 1.442695, %v1547_v49  ;;  %1796 = vadd.xlane.f32.xlu0 %v1795_v12  ;;  %4067 = vpow2.f32 %v1659_v62  ;;  %v5775_v12 = vld [vmem:[#allocation13_spill] sm:$0xff] }
 0x1d6   :  { %v4058_v6 = vpop.eup %4057  ;;  %v1641_v53 = vmul.f32 1.442695, %v1539_v0  ;;  %v1482_v30 = vpop.xlane.xlu1 %1481 }
 0x1d7   :  { %4069 = vpow2.f32 %v1657_v34  ;;  %v1558_v9 = vsub.f32 %v4973_v55, %v1482_v30  ;;  %v1458_v40 = vpop.xlane.xlu0 %1457  ;;  %v1804_v36 = vsel %vm180_vm0, %v4058_v6, 0.0  ;;  %v4060_v46 = vpop.eup %4059 }
 0x1d8   :  { %4071 = vpow2.f32 %v1641_v53  ;;  %v1550_v21 = vsub.f32 %v4971_v54, %v1458_v40  ;;  %1805 = vadd.xlane.f32.xlu1 %v1804_v36  ;;  %v1828_v54 = vsel %vm180_vm0, %v4060_v46, 0.0 }
 0x1d9   :  { %v4062_v29 = vpop.eup %4061  ;;  %1820 = vadd.xlane.f32.xlu0 %v1819_v50  ;;  %v1679_v19 = vmul.f32 1.442695, %v1558_v9  ;;  %v5776_v9 = vld [vmem:[#allocation18_spill] sm:$0xff]  ;;  %v5777_v50 = vld [vmem:[#allocation17_spill] sm:$0xff] }
 0x1da   :  { %v4064_v20 = vpop.eup %4063  ;;  %v1663_v5 = vmul.f32 1.442695, %v1550_v21  ;;  %v1479_v42 = vpop.xlane.xlu1 %1478  ;;  %3771 = vmatprep.mubr.msk.f32.mxu1 %vm180_vm0, %v4062_v29 }
 0x1db   :  { %v1557_v55 = vsub.f32 %v4979_v61, %v1479_v42  ;;  %3751 = vmatprep.mubr.msk.f32.mxu0 %vm180_vm0, %v4064_v20  ;;  %3772 = vmatmul.mubr.msk.f32.gmra.mrb[52].mxu1 %vm180_vm0, %v4060_v46  ;;  %v1455_v60 = vpop.xlane.xlu0 %1454  ;;  %v1801_v52 = vsel %vm180_vm0, %v4064_v20, 0.0 }
 0x1dc   :  { %4073 = vpow2.f32 %v1663_v5  ;;  %v1549_v26 = vsub.f32 %v4975_v57, %v1455_v60  ;;  %1829 = vadd.xlane.f32.xlu1 %v1828_v54  ;;  %3752 = vmatmul.mubr.msk.f32.gmra.mrb[52].mxu0 %vm180_vm0, %v4058_v6  ;;  %v1825_v57 = vsel %vm180_vm0, %v4062_v29, 0.0  ;;  %v5778_v54 = vld [vmem:[#allocation16_spill] sm:$0xff] }
 0x1dd   :  { %v1677_v13 = vmul.f32 1.442695, %v1557_v55  ;;  %1802 = vadd.xlane.f32.xlu0 %v1801_v52  ;;  %4075 = vpow2.f32 %v1679_v19 }
 0x1de   :  { %v4066_v3 = vpop.eup %4065  ;;  %v1661_v61 = vmul.f32 1.442695, %v1549_v26  ;;  %v1488_v2 = vpop.xlane.xlu1 %1487 }
 0x1df   :  { %4077 = vpow2.f32 %v1677_v13  ;;  %v1560_v7 = vsub.f32 %v4989_v23, %v1488_v2  ;;  %v1464_v32 = vpop.xlane.xlu0 %1463  ;;  %v1810_v59 = vsel %vm180_vm0, %v4066_v3, 0.0  ;;  %v4068_v56 = vpop.eup %4067 }
 0x1e0   :  { %4079 = vpow2.f32 %v1661_v61  ;;  %v1552_v45 = vsub.f32 %v4985_v1, %v1464_v32  ;;  %1811 = vadd.xlane.f32.xlu1 %v1810_v59  ;;  %v1834_v1 = vsel %vm180_vm0, %v4068_v56, 0.0  ;;  %v5779_v61 = vld [vmem:[#allocation15_spill] sm:$0xff] }
 0x1e1   :  { %v4070_v10 = vpop.eup %4069  ;;  %1826 = vadd.xlane.f32.xlu0 %v1825_v57  ;;  %v1683_v22 = vmul.f32 1.442695, %v1560_v7 }
 0x1e2   :  { %v4072_v25 = vpop.eup %4071  ;;  %v1667_v27 = vmul.f32 1.442695, %v1552_v45  ;;  %v1485_v8 = vpop.xlane.xlu1 %1484  ;;  %3774 = vmatprep.mubr.msk.f32.mxu1 %vm180_vm0, %v4070_v10 }
 0x1e3   :  { %v1559_v23 = vsub.f32 %v4993_v15, %v1485_v8  ;;  %3754 = vmatprep.mubr.msk.f32.mxu0 %vm180_vm0, %v4072_v25  ;;  %3775 = vmatmul.mubr.msk.f32.gmra.mrb[54].mxu1 %vm180_vm0, %v4068_v56  ;;  %v1461_v44 = vpop.xlane.xlu0 %1460  ;;  %v1807_v47 = vsel %vm180_vm0, %v4072_v25, 0.0 }
 0x1e4   :  { %4081 = vpow2.f32 %v1667_v27  ;;  %v1551_v16 = vsub.f32 %v4991_v37, %v1461_v44  ;;  %1835 = vadd.xlane.f32.xlu1 %v1834_v1  ;;  %3755 = vmatmul.mubr.msk.f32.gmra.mrb[54].mxu0 %vm180_vm0, %v4066_v3  ;;  %v1831_v37 = vsel %vm180_vm0, %v4070_v10, 0.0 }
 0x1e5   :  { %v1681_v33 = vmul.f32 1.442695, %v1559_v23  ;;  %1808 = vadd.xlane.f32.xlu0 %v1807_v47  ;;  %4083 = vpow2.f32 %v1683_v22 }
 0x1e6   :  { %v4074_v18 = vpop.eup %4073  ;;  %v1665_v15 = vmul.f32 1.442695, %v1551_v16  ;;  %v1494_v31 = vpop.xlane.xlu1 %1493 }
 0x1e7   :  { %4085 = vpow2.f32 %v1681_v33  ;;  %v1562_v14 = vsub.f32 %v5772_v39, %v1494_v31  ;;  %v1470_v4 = vpop.xlane.xlu0 %1469  ;;  %v1840_v28 = vsel %vm180_vm0, %v4074_v18, 0.0  ;;  %v4076_v17 = vpop.eup %4075 }
 0x1e8   :  { %4087 = vpow2.f32 %v1665_v15  ;;  %v1554_v48 = vsub.f32 %v5773_v35, %v1470_v4  ;;  %1841 = vadd.xlane.f32.xlu1 %v1840_v28  ;;  %v1864_v43 = vsel %vm180_vm0, %v4076_v17, 0.0 }
 0x1e9   :  { %v4078_v63 = vpop.eup %4077  ;;  %1832 = vadd.xlane.f32.xlu0 %v1831_v37  ;;  %v1687_v38 = vmul.f32 1.442695, %v1562_v14 }
 0x1ea   :  { %v4080_v24 = vpop.eup %4079  ;;  %v1671_v41 = vmul.f32 1.442695, %v1554_v48  ;;  %v1491_v62 = vpop.xlane.xlu1 %1490  ;;  %3805 = vmatprep.mubr.msk.f32.mxu1 %vm180_vm0, %v4078_v63  ;;  %v1861_v20 = vsel %vm180_vm0, %v4078_v63, 0.0 }
 0x1eb   :  { %v1561_v58 = vsub.f32 %v5774_v51, %v1491_v62  ;;  %3785 = vmatprep.mubr.msk.f32.mxu0 %vm180_vm0, %v4080_v24  ;;  %3806 = vmatmul.mubr.msk.f32.vlgmr.msra.gmra.mrb[56].mxu1 %vm180_vm0, %v4076_v17  ;;  %v1467_v49 = vpop.xlane.xlu0 %1466  ;;  %v1837_v11 = vsel %vm180_vm0, %v4080_v24, 0.0 }
 0x1ec   :  { %4089 = vpow2.f32 %v1671_v41  ;;  %v1553_v0 = vsub.f32 %v5775_v12, %v1467_v49  ;;  %1865 = vadd.xlane.f32.xlu1 %v1864_v43  ;;  %3786 = vmatmul.mubr.msk.f32.vlgmr.msra.gmra.mrb[56].mxu0 %vm180_vm0, %v4074_v18 }
 0x1ed   :  { %v1685_v34 = vmul.f32 1.442695, %v1561_v58  ;;  %1838 = vadd.xlane.f32.xlu0 %v1837_v11  ;;  %4091 = vpow2.f32 %v1687_v38 }
 0x1ee   :  { %v4082_v6 = vpop.eup %4081  ;;  %v1669_v53 = vmul.f32 1.442695, %v1553_v0  ;;  %v1497_v30 = vpop.xlane.xlu1 %1496 }
 0x1ef   :  { %4093 = vpow2.f32 %v1685_v34  ;;  %v1563_v40 = vsub.f32 %v5776_v9, %v1497_v30  ;;  %v1473_v36 = vpop.xlane.xlu0 %1472  ;;  %v1846_v46 = vsel %vm180_vm0, %v4082_v6, 0.0  ;;  %v4084_v21 = vpop.eup %4083 }
 0x1f0   :  { %4095 = vpow2.f32 %v1669_v53  ;;  %v1555_v29 = vsub.f32 %v5777_v50, %v1473_v36  ;;  %1847 = vadd.xlane.f32.xlu1 %v1846_v46  ;;  %v1870_v13 = vsel %vm180_vm0, %v4084_v21, 0.0 }
 0x1f1   :  { %v4086_v19 = vpop.eup %4085  ;;  %v1689_v5 = vmul.f32 1.442695, %v1563_v40  ;;  %1862 = vadd.xlane.f32.xlu0 %v1861_v20 }
 0x1f2   :  { %v4088_v42 = vpop.eup %4087  ;;  %v1673_v55 = vmul.f32 1.442695, %v1555_v29  ;;  %v1500_v60 = vpop.xlane.xlu1 %1499  ;;  %3808 = vmatprep.mubr.msk.f32.mxu1 %vm180_vm0, %v4086_v19  ;;  %v1867_v57 = vsel %vm180_vm0, %v4086_v19, 0.0 }
 0x1f3   :  { %4097 = vpow2.f32 %v1689_v5  ;;  %v1564_v52 = vsub.f32 %v5778_v54, %v1500_v60  ;;  %3788 = vmatprep.mubr.msk.f32.mxu0 %vm180_vm0, %v4088_v42  ;;  %3809 = vmatmul.mubr.msk.f32.gmra.mrb[58].mxu1 %vm180_vm0, %v4084_v21  ;;  %v1476_v26 = vpop.xlane.xlu0 %1475  ;;  %v1843_v3 = vsel %vm180_vm0, %v4088_v42, 0.0 }
 0x1f4   :  { %4099 = vpow2.f32 %v1673_v55  ;;  %v1556_v2 = vsub.f32 %v5779_v61, %v1476_v26  ;;  %1871 = vadd.xlane.f32.xlu1 %v1870_v13  ;;  %3789 = vmatmul.mubr.msk.f32.gmra.mrb[58].mxu0 %vm180_vm0, %v4082_v6 }
 0x1f5   :  { %v1691_v7 = vmul.f32 1.442695, %v1564_v52  ;;  %1844 = vadd.xlane.f32.xlu0 %v1843_v3 }
 0x1f6   :  { %v4090_v32 = vpop.eup %4089  ;;  %v1675_v59 = vmul.f32 1.442695, %v1556_v2 }
 0x1f7   :  { %4101 = vpow2.f32 %v1691_v7  ;;  %v1852_v56 = vsel %vm180_vm0, %v4090_v32, 0.0  ;;  %v4092_v45 = vpop.eup %4091 }
 0x1f8   :  { %4103 = vpow2.f32 %v1675_v59  ;;  %1853 = vadd.xlane.f32.xlu1 %v1852_v56  ;;  %v1876_v22 = vsel %vm180_vm0, %v4092_v45, 0.0 }
 0x1f9   :  { %v4094_v10 = vpop.eup %4093  ;;  %1868 = vadd.xlane.f32.xlu0 %v1867_v57 }
 0x1fa   :  { %v4096_v25 = vpop.eup %4095  ;;  %3811 = vmatprep.mubr.msk.f32.mxu1 %vm180_vm0, %v4094_v10  ;;  %v1873_v44 = vsel %vm180_vm0, %v4094_v10, 0.0 }
 0x1fb   :  { %3791 = vmatprep.mubr.msk.f32.mxu0 %vm180_vm0, %v4096_v25  ;;  %3812 = vmatmul.mubr.msk.f32.gmra.mrb[60].mxu1 %vm180_vm0, %v4092_v45  ;;  %v1849_v27 = vsel %vm180_vm0, %v4096_v25, 0.0 }
 0x1fc   :  { %1877 = vadd.xlane.f32.xlu1 %v1876_v22  ;;  %3792 = vmatmul.mubr.msk.f32.gmra.mrb[60].mxu0 %vm180_vm0, %v4090_v32 }
 0x1fd   :  { %v4098_v8 = vpop.eup %4097  ;;  %1850 = vadd.xlane.f32.xlu0 %v1849_v27 }
 0x1fe   :  { %v4100_v23 = vpop.eup %4099  ;;  %3814 = vmatprep.mubr.msk.f32.mxu1 %vm180_vm0, %v4098_v8  ;;  %v1879_v15 = vsel %vm180_vm0, %v4098_v8, 0.0 }
 0x1ff   :  { %3794 = vmatprep.mubr.msk.f32.mxu0 %vm180_vm0, %v4100_v23  ;;  %v1855_v33 = vsel %vm180_vm0, %v4100_v23, 0.0 }
 0x201   :  { %v4102_v1 = vpop.eup %4101  ;;  %1874 = vadd.xlane.f32.xlu0 %v1873_v44 }
 0x202   :  { %v4104_v47 = vpop.eup %4103  ;;  %3815 = vmatmul.mubr.msk.f32.gmra.mrb[62].mxu1 %vm180_vm0, %v4102_v1  ;;  %v1882_v18 = vsel %vm180_vm0, %v4102_v1, 0.0 }
 0x203   :  { %3795 = vmatmul.mubr.msk.f32.gmra.mrb[62].mxu0 %vm180_vm0, %v4104_v47  ;;  %v1858_v16 = vsel %vm180_vm0, %v4104_v47, 0.0 }
 0x204   :  { %1859 = vadd.xlane.f32.xlu1 %v1858_v16 }
 0x205   :  { %1856 = vadd.xlane.f32.xlu0 %v1855_v33 }
 0x208   :  { %1883 = vadd.xlane.f32.xlu1 %v1882_v18 }
 0x209   :  { %1880 = vadd.xlane.f32.xlu0 %v1879_v15 }
 0x214   :  { %v1698_v31 = vpop.xlane.xlu1 %1697 }
 0x215   :  { %v1695_v39 = vpop.xlane.xlu0 %1694  ;;  %4105 = vrcp.f32 %v1698_v31 }
 0x216   :  { %4107 = vrcp.f32 %v1695_v39 }
 0x218   :  { %v1722_v14 = vpop.xlane.xlu1 %1721 }
 0x219   :  { %v1719_v28 = vpop.xlane.xlu0 %1718  ;;  %4109 = vrcp.f32 %v1722_v14 }
 0x21a   :  { %4111 = vrcp.f32 %v1719_v28 }
 0x21d   :  { %v1704_v4 = vpop.xlane.xlu1 %1703 }
 0x21e   :  { %4113 = vrcp.f32 %v1704_v4 }
 0x21f   :  { %v4106_v40 = vpop.eup %4105 }
 0x220   :  { %v4108_v46 = vpop.eup %4107 }
 0x221   :  { %v1728_v17 = vpop.xlane.xlu1 %1727 }
 0x222   :  { %v1701_v35 = vpop.xlane.xlu0 %1700  ;;  %4115 = vrcp.f32 %v1728_v17 }
 0x223   :  { %v4110_v5 = vpop.eup %4109 }
 0x224   :  { %v4112_v55 = vpop.eup %4111 }
 0x225   :  { %v1710_v37 = vpop.xlane.xlu1 %1709 }
 0x226   :  { %v1725_v48 = vpop.xlane.xlu0 %1724 }
 0x227   :  { %4117 = vrcp.f32 %v1725_v48 }
 0x228   :  { %4119 = vrcp.f32 %v1701_v35  ;;  %v4114_v3 = vpop.eup %4113 }
 0x229   :  { %v1734_v24 = vpop.xlane.xlu1 %1733  ;;  %4121 = vrcp.f32 %v1710_v37 }
 0x22a   :  { %v1707_v63 = vpop.xlane.xlu0 %1706  ;;  %4123 = vrcp.f32 %v1734_v24 }
 0x22c   :  { %v4116_v61 = vpop.eup %4115 }
 0x22d   :  { %v5369_v62 = vpop.xlane.xlu1 %1715 }
 0x22e   :  { %v1731_v38 = vpop.xlane.xlu0 %1730 }
 0x22f   :  { %4125 = vrcp.f32 %v1731_v38 }
 0x230   :  { %4127 = vrcp.f32 %v1707_v63 }
 0x231   :  { %v5373_v58 = vpop.xlane.xlu1 %1739  ;;  %v4118_v7 = vpop.eup %4117  ;;  %4129 = vrcp.f32 %v5369_v62 }
 0x232   :  { %v5367_v41 = vpop.xlane.xlu0 %1712  ;;  %v4120_v45 = vpop.eup %4119  ;;  %4131 = vrcp.f32 %v5373_v58 }
 0x233   :  { %v4122_v23 = vpop.eup %4121 }
 0x234   :  { %v4124_v44 = vpop.eup %4123 }
 0x235   :  { %v5377_v43 = vpop.xlane.xlu1 %1745 }
 0x236   :  { %v5371_v51 = vpop.xlane.xlu0 %1736 }
 0x237   :  { %4133 = vrcp.f32 %v5371_v51 }
 0x238   :  { %4135 = vrcp.f32 %v5367_v41 }
 0x239   :  { %v5381_v12 = vpop.xlane.xlu1 %1769  ;;  %v4126_v16 = vpop.eup %4125  ;;  %4137 = vrcp.f32 %v5377_v43 }
 0x23a   :  { %v5375_v49 = vpop.xlane.xlu0 %1742  ;;  %v4128_v31 = vpop.eup %4127  ;;  %4139 = vrcp.f32 %v5381_v12 }
 0x23b   :  { %v4130_v48 = vpop.eup %4129 }
 0x23c   :  { %v4132_v37 = vpop.eup %4131 }
 0x23d   :  { %v5385_v34 = vpop.xlane.xlu1 %1751 }
 0x23e   :  { %v5379_v11 = vpop.xlane.xlu0 %1766 }
 0x23f   :  { %4141 = vrcp.f32 %v5379_v11 }
 0x240   :  { %4143 = vrcp.f32 %v5375_v49 }
 0x241   :  { %v5389_v53 = vpop.xlane.xlu1 %1775  ;;  %v4134_v38 = vpop.eup %4133  ;;  %4145 = vrcp.f32 %v5385_v34 }
 0x242   :  { %v5383_v0 = vpop.xlane.xlu0 %1748  ;;  %v4136_v58 = vpop.eup %4135  ;;  %4147 = vrcp.f32 %v5389_v53 }
 0x245   :  { %v5393_v9 = vpop.xlane.xlu1 %1757 }
 0x246   :  { %v5387_v6 = vpop.xlane.xlu0 %1772 }
 0x247   :  { %4149 = vrcp.f32 %v5387_v6 }
 0x248   :  { %4151 = vrcp.f32 %v5383_v0 }
 0x249   :  { %v5397_v19 = vpop.xlane.xlu1 %1781  ;;  %4153 = vrcp.f32 %v5393_v9 }
 0x24a   :  { %v5391_v30 = vpop.xlane.xlu0 %1754  ;;  %4155 = vrcp.f32 %v5397_v19 }
 0x24d   :  { %v5417_v13 = vpop.xlane.xlu1 %1763 }
 0x24e   :  { %v5395_v21 = vpop.xlane.xlu0 %1778 }
 0x24f   :  { %4157 = vrcp.f32 %v5395_v21 }
 0x250   :  { %4159 = vrcp.f32 %v5391_v30 }
 0x251   :  { %v5425_v8 = vpop.xlane.xlu1 %1787  ;;  %4161 = vrcp.f32 %v5417_v13 }
 0x252   :  { %v5407_v26 = vpop.xlane.xlu0 %1760  ;;  %4163 = vrcp.f32 %v5425_v8 }
 0x255   :  { %v5445_v39 = vpop.xlane.xlu1 %1793 }
 0x256   :  { %v5419_v57 = vpop.xlane.xlu0 %1784 }
 0x257   :  { %4165 = vrcp.f32 %v5419_v57 }
 0x258   :  { %4167 = vrcp.f32 %v5407_v26 }
 0x259   :  { %v5469_v63 = vpop.xlane.xlu1 %1817 }
 0x25a   :  { %v5443_v1 = vpop.xlane.xlu0 %1790 }
 0x25b   :  { %v3667_v36 = vpop.f32.mrb[32].mxu0 }
 0x25c   :  { %v3014_v50 = vmul.f32 %v4106_v40, %v3667_v36  ;;  %v2007_v29 = vpop.f32.mrb[33].mxu0 }
 0x25d   :  { %v3013_v20 = vmul.f32 %v4108_v46, %v2007_v29  ;;  %v5491_v49 = vpop.xlane.xlu1 %1799  ;;  %v4138_v46 = vpop.eup %4137  ;;  %4169 = vrcp.f32 %v5445_v39 }
 0x25e   :  { %3078 = vst.msk [vmem:[%s5729_s4 + $0x8] sm:$0xff] %vm180_vm0, %v3014_v50  ;;  %v5465_v35 = vpop.xlane.xlu0 %1814  ;;  %v4140_v50 = vpop.eup %4139  ;;  %4171 = vrcp.f32 %v5469_v63 }
 0x25f   :  { %3077 = vst.msk [vmem:[%s5729_s4] sm:$0xff] %vm180_vm0, %v3013_v20  ;;  %v3687_v42 = vpop.f32.mrb[32].mxu1  ;;  %v4142_v20 = vpop.eup %4141  ;;  %4173 = vrcp.f32 %v5465_v35 }
 0x260   :  { %v3022_v60 = vmul.f32 %v4110_v5, %v3687_v42  ;;  %v2136_v54 = vpop.f32.mrb[33].mxu1 }
 0x261   :  { %v3021_v52 = vmul.f32 %v4112_v55, %v2136_v54  ;;  %v4144_v55 = vpop.eup %4143  ;;  %v5501_v53 = vpop.xlane.xlu1 %1823  ;;  %4175 = vrcp.f32 %v5443_v1 }
 0x262   :  { %3086 = vst.msk [vmem:[%s5729_s4 + $0x48] sm:$0xff] %vm180_vm0, %v3022_v60  ;;  %v5475_v12 = vpop.xlane.xlu0 %1796  ;;  %v4146_v0 = vpop.eup %4145  ;;  %4177 = vrcp.f32 %v5491_v49 }
 0x263   :  { %3085 = vst.msk [vmem:[%s5729_s4 + $0x40] sm:$0xff] %vm180_vm0, %v3021_v52 }
 0x266   :  { %v3690_v2 = vpop.f32.mrb[34].mxu1  ;;  %v5495_v60 = vpop.xlane.xlu0 %1820 }
 0x267   :  { %v3024_v32 = vmul.f32 %v4116_v61, %v3690_v2  ;;  %v3670_v59 = vpop.f32.mrb[34].mxu0  ;;  %v2146_v56 = vpop.f32.mrb[35].mxu1 }
 0x268   :  { %v3016_v10 = vmul.f32 %v4114_v3, %v3670_v59  ;;  %v3023_v25 = vmul.f32 %v4118_v7, %v2146_v56  ;;  %v2017_v22 = vpop.f32.mrb[35].mxu0  ;;  %v4148_v61 = vpop.eup %4147  ;;  %4179 = vrcp.f32 %v5501_v53 }
 0x269   :  { %3088 = vst.msk [vmem:[%s5729_s4 + $0x58] sm:$0xff] %vm180_vm0, %v3024_v32  ;;  %v3015_v27 = vmul.f32 %v4120_v45, %v2017_v22  ;;  %v4150_v32 = vpop.eup %4149  ;;  %4181 = vrcp.f32 %v5495_v60 }
 0x26a   :  { %3080 = vst.msk [vmem:[%s5729_s4 + $0x18] sm:$0xff] %vm180_vm0, %v3016_v10  ;;  %3087 = vst.msk [vmem:[%s5729_s4 + $0x50] sm:$0xff] %vm180_vm0, %v3023_v25  ;;  %v5519_v2 = vpop.xlane.xlu0 %1802  ;;  %v4152_v45 = vpop.eup %4151  ;;  %4183 = vrcp.f32 %v5475_v12 }
 0x26b   :  { %3079 = vst.msk [vmem:[%s5729_s4 + $0x10] sm:$0xff] %vm180_vm0, %v3015_v27  ;;  %v5521_v10 = vpop.xlane.xlu1 %1805  ;;  %v4154_v19 = vpop.eup %4153 }
 0x26c   :  { %4185 = vrcp.f32 %v5521_v10 }
 0x26e   :  { %v3693_v47 = vpop.f32.mrb[36].mxu1  ;;  %v5541_v30 = vpop.xlane.xlu0 %1826 }
 0x26f   :  { %v3026_v33 = vmul.f32 %v4124_v44, %v3693_v47  ;;  %v3673_v18 = vpop.f32.mrb[36].mxu0  ;;  %v2156_v15 = vpop.f32.mrb[37].mxu1 }
 0x270   :  { %v3018_v14 = vmul.f32 %v4122_v23, %v3673_v18  ;;  %v3025_v4 = vmul.f32 %v4126_v16, %v2156_v15  ;;  %v2027_v28 = vpop.f32.mrb[37].mxu0  ;;  %v4156_v23 = vpop.eup %4155 }
 0x271   :  { %3090 = vst.msk [vmem:[%s5729_s4 + $0x68] sm:$0xff] %vm180_vm0, %v3026_v33  ;;  %v3017_v17 = vmul.f32 %v4128_v31, %v2027_v28  ;;  %v1830_v44 = vpop.xlane.xlu1 %1829  ;;  %v4158_v16 = vpop.eup %4157 }
 0x272   :  { %3082 = vst.msk [vmem:[%s5729_s4 + $0x28] sm:$0xff] %vm180_vm0, %v3018_v14  ;;  %3089 = vst.msk [vmem:[%s5729_s4 + $0x60] sm:$0xff] %vm180_vm0, %v3025_v4  ;;  %v4160_v15 = vpop.eup %4159  ;;  %v5549_v57 = vpop.xlane.xlu0 %1808  ;;  %4187 = vrcp.f32 %v1830_v44 }
 0x273   :  { %3081 = vst.msk [vmem:[%s5729_s4 + $0x20] sm:$0xff] %vm180_vm0, %v3017_v17  ;;  %v4162_v28 = vpop.eup %4161  ;;  %4189 = vrcp.f32 %v5541_v30 }
 0x274   :  { %v4164_v17 = vpop.eup %4163  ;;  %4191 = vrcp.f32 %v5519_v2 }
 0x275   :  { %v5565_v26 = vpop.xlane.xlu1 %1811 }
 0x276   :  { %v3696_v24 = vpop.f32.mrb[38].mxu1  ;;  %4193 = vrcp.f32 %v5565_v26 }
 0x277   :  { %v3028_v41 = vmul.f32 %v4132_v37, %v3696_v24  ;;  %v3676_v62 = vpop.f32.mrb[38].mxu0  ;;  %v2166_v51 = vpop.f32.mrb[39].mxu1 }
 0x278   :  { %v3020_v43 = vmul.f32 %v4130_v48, %v3676_v62  ;;  %v3027_v40 = vmul.f32 %v4134_v38, %v2166_v51  ;;  %v2037_v36 = vpop.f32.mrb[39].mxu0  ;;  %v4166_v37 = vpop.eup %4165 }
 0x279   :  { %3092 = vst.msk [vmem:[%s5729_s4 + $0x78] sm:$0xff] %vm180_vm0, %v3028_v41  ;;  %v3019_v11 = vmul.f32 %v4136_v58, %v2037_v36  ;;  %v4168_v41 = vpop.eup %4167  ;;  %v1833_v62 = vpop.xlane.xlu0 %1832 }
 0x27a   :  { %3084 = vst.msk [vmem:[%s5729_s4 + $0x38] sm:$0xff] %vm180_vm0, %v3020_v43  ;;  %3091 = vst.msk [vmem:[%s5729_s4 + $0x70] sm:$0xff] %vm180_vm0, %v3027_v40  ;;  %v1836_v35 = vpop.xlane.xlu1 %1835  ;;  %v4170_v1 = vpop.eup %4169 }
 0x27b   :  { %3083 = vst.msk [vmem:[%s5729_s4 + $0x30] sm:$0xff] %vm180_vm0, %v3019_v11  ;;  %v4172_v40 = vpop.eup %4171  ;;  %4195 = vrcp.f32 %v1836_v35 }
 0x27c   :  { %4197 = vrcp.f32 %v1833_v62 }
 0x27d   :  { %v5589_v36 = vpop.xlane.xlu0 %1838  ;;  %4199 = vrcp.f32 %v5549_v57 }
 0x27e   :  { %v3727_v29 = vpop.f32.mrb[40].mxu1 }
 0x27f   :  { %v3038_v5 = vmul.f32 %v4140_v50, %v3727_v29  ;;  %v3707_v42 = vpop.f32.mrb[40].mxu0  ;;  %v2394_v34 = vpop.f32.mrb[41].mxu1 }
 0x280   :  { %v3030_v54 = vmul.f32 %v4138_v46, %v3707_v42  ;;  %v3037_v52 = vmul.f32 %v4142_v20, %v2394_v34  ;;  %v2265_v3 = vpop.f32.mrb[41].mxu0  ;;  %v4174_v46 = vpop.eup %4173 }
 0x281   :  { %3102 = vst.msk [vmem:[%s5729_s4 + $0xc8] sm:$0xff] %vm180_vm0, %v3038_v5  ;;  %v3029_v6 = vmul.f32 %v4144_v55, %v2265_v3  ;;  %v4176_v20 = vpop.eup %4175  ;;  %v1842_v5 = vpop.xlane.xlu1 %1841 }
 0x282   :  { %3094 = vst.msk [vmem:[%s5729_s4 + $0x88] sm:$0xff] %vm180_vm0, %v3030_v54  ;;  %3101 = vst.msk [vmem:[%s5729_s4 + $0xc0] sm:$0xff] %vm180_vm0, %v3037_v52  ;;  %v1863_v12 = vpop.xlane.xlu0 %1862  ;;  %v4178_v54 = vpop.eup %4177  ;;  %4201 = vrcp.f32 %v1842_v5 }
 0x283   :  { %3093 = vst.msk [vmem:[%s5729_s4 + $0x80] sm:$0xff] %vm180_vm0, %v3029_v6  ;;  %v4180_v52 = vpop.eup %4179 }
 0x284   :  { %v4182_v53 = vpop.eup %4181 }
 0x285   :  { %v1866_v3 = vpop.xlane.xlu1 %1865 }
 0x286   :  { %v3730_v7 = vpop.f32.mrb[42].mxu1  ;;  %v1845_v10 = vpop.xlane.xlu0 %1844  ;;  %4203 = vrcp.f32 %v1866_v3 }
 0x287   :  { %v3040_v59 = vmul.f32 %v4148_v61, %v3730_v7  ;;  %v3710_v56 = vpop.f32.mrb[42].mxu0  ;;  %v2404_v9 = vpop.f32.mrb[43].mxu1  ;;  %4205 = vrcp.f32 %v1863_v12 }
 0x288   :  { %v3032_v25 = vmul.f32 %v4146_v0, %v3710_v56  ;;  %v3039_v22 = vmul.f32 %v4150_v32, %v2404_v9  ;;  %v2275_v27 = vpop.f32.mrb[43].mxu0  ;;  %v4184_v32 = vpop.eup %4183  ;;  %4207 = vrcp.f32 %v5589_v36 }
 0x289   :  { %3104 = vst.msk [vmem:[%s5729_s4 + $0xd8] sm:$0xff] %vm180_vm0, %v3040_v59  ;;  %v3031_v21 = vmul.f32 %v4152_v45, %v2275_v27  ;;  %v1848_v2 = vpop.xlane.xlu1 %1847 }
 0x28a   :  { %3096 = vst.msk [vmem:[%s5729_s4 + $0x98] sm:$0xff] %vm180_vm0, %v3032_v25  ;;  %3103 = vst.msk [vmem:[%s5729_s4 + $0xd0] sm:$0xff] %vm180_vm0, %v3039_v22  ;;  %v4186_v25 = vpop.eup %4185  ;;  %4209 = vrcp.f32 %v1848_v2 }
 0x28b   :  { %3095 = vst.msk [vmem:[%s5729_s4 + $0x90] sm:$0xff] %vm180_vm0, %v3031_v21  ;;  %v4188_v22 = vpop.eup %4187 }
 0x28c   :  { %v4190_v21 = vpop.eup %4189 }
 0x28d   :  { %v4192_v44 = vpop.eup %4191 }
 0x28e   :  { %v3733_v47 = vpop.f32.mrb[44].mxu1 }
 0x28f   :  { %v3042_v33 = vmul.f32 %v4156_v23, %v3733_v47  ;;  %v3713_v13 = vpop.f32.mrb[44].mxu0  ;;  %v2414_v18 = vpop.f32.mrb[45].mxu1 }
 0x290   :  { %v3034_v31 = vmul.f32 %v4154_v19, %v3713_v13  ;;  %v3041_v14 = vmul.f32 %v4158_v16, %v2414_v18  ;;  %v2285_v4 = vpop.f32.mrb[45].mxu0  ;;  %v1869_v47 = vpop.xlane.xlu0 %1868 }
 0x291   :  { %3106 = vst.msk [vmem:[%s5729_s4 + $0xe8] sm:$0xff] %vm180_vm0, %v3042_v33  ;;  %v3033_v8 = vmul.f32 %v4160_v15, %v2285_v4  ;;  %v1872_v15 = vpop.xlane.xlu1 %1871 }
 0x292   :  { %3098 = vst.msk [vmem:[%s5729_s4 + $0xa8] sm:$0xff] %vm180_vm0, %v3034_v31  ;;  %3105 = vst.msk [vmem:[%s5729_s4 + $0xe0] sm:$0xff] %vm180_vm0, %v3041_v14  ;;  %v4194_v31 = vpop.eup %4193  ;;  %4211 = vrcp.f32 %v1872_v15 }
 0x293   :  { %3097 = vst.msk [vmem:[%s5729_s4 + $0xa0] sm:$0xff] %vm180_vm0, %v3033_v8  ;;  %v4196_v14 = vpop.eup %4195  ;;  %4213 = vrcp.f32 %v1869_v47 }
 0x294   :  { %v1851_v4 = vpop.xlane.xlu0 %1850  ;;  %v4198_v57 = vpop.eup %4197  ;;  %4215 = vrcp.f32 %v1845_v10 }
 0x296   :  { %v3736_v48 = vpop.f32.mrb[46].mxu1 }
 0x297   :  { %v3044_v24 = vmul.f32 %v4164_v17, %v3736_v48  ;;  %v3716_v38 = vpop.f32.mrb[46].mxu0  ;;  %v2424_v39 = vpop.f32.mrb[47].mxu1 }
 0x298   :  { %v3036_v51 = vmul.f32 %v4162_v28, %v3716_v38  ;;  %v3043_v58 = vmul.f32 %v4166_v37, %v2424_v39  ;;  %v2295_v43 = vpop.f32.mrb[47].mxu0  ;;  %v4200_v48 = vpop.eup %4199 }
 0x299   :  { %3108 = vst.msk [vmem:[%s5729_s4 + $0xf8] sm:$0xff] %vm180_vm0, %v3044_v24  ;;  %v3035_v63 = vmul.f32 %v4168_v41, %v2295_v43  ;;  %v1854_v37 = vpop.xlane.xlu1 %1853  ;;  %v4202_v62 = vpop.eup %4201 }
 0x29a   :  { %3100 = vst.msk [vmem:[%s5729_s4 + $0xb8] sm:$0xff] %vm180_vm0, %v3036_v51  ;;  %3107 = vst.msk [vmem:[%s5729_s4 + $0xf0] sm:$0xff] %vm180_vm0, %v3043_v58  ;;  %v1875_v51 = vpop.xlane.xlu0 %1874  ;;  %v4204_v58 = vpop.eup %4203  ;;  %4217 = vrcp.f32 %v1854_v37 }
 0x29b   :  { %3099 = vst.msk [vmem:[%s5729_s4 + $0xb0] sm:$0xff] %vm180_vm0, %v3035_v63  ;;  %v4206_v35 = vpop.eup %4205 }
 0x29d   :  { %v1878_v43 = vpop.xlane.xlu1 %1877 }
 0x29e   :  { %v3767_v11 = vpop.f32.mrb[48].mxu1  ;;  %v1857_v5 = vpop.xlane.xlu0 %1856  ;;  %4219 = vrcp.f32 %v1878_v43 }
 0x29f   :  { %v3054_v50 = vmul.f32 %v4172_v40, %v3767_v11  ;;  %v3747_v29 = vpop.f32.mrb[48].mxu0  ;;  %v2652_v49 = vpop.f32.mrb[49].mxu1  ;;  %4221 = vrcp.f32 %v1875_v51 }
 0x2a0   :  { %v3046_v42 = vmul.f32 %v4170_v1, %v3747_v29  ;;  %v3053_v34 = vmul.f32 %v4174_v46, %v2652_v49  ;;  %v2523_v55 = vpop.f32.mrb[49].mxu0  ;;  %v4208_v11 = vpop.eup %4207  ;;  %4223 = vrcp.f32 %v1851_v4 }
 0x2a1   :  { %3118 = vst.msk [vmem:[%s5729_s4 + $0x148] sm:$0xff] %vm180_vm0, %v3054_v50  ;;  %v3045_v60 = vmul.f32 %v4176_v20, %v2523_v55  ;;  %v1860_v20 = vpop.xlane.xlu1 %1859 }
 0x2a2   :  { %3110 = vst.msk [vmem:[%s5729_s4 + $0x108] sm:$0xff] %vm180_vm0, %v3046_v42  ;;  %3117 = vst.msk [vmem:[%s5729_s4 + $0x140] sm:$0xff] %vm180_vm0, %v3053_v34  ;;  %v4210_v42 = vpop.eup %4209  ;;  %4225 = vrcp.f32 %v1860_v20 }
 0x2a3   :  { %3109 = vst.msk [vmem:[%s5729_s4 + $0x100] sm:$0xff] %vm180_vm0, %v3045_v60  ;;  %v4212_v34 = vpop.eup %4211 }
 0x2a4   :  { %v4214_v60 = vpop.eup %4213 }
 0x2a5   :  { %v4216_v3 = vpop.eup %4215 }
 0x2a6   :  { %v3770_v6 = vpop.f32.mrb[50].mxu1 }
 0x2a7   :  { %v3056_v0 = vmul.f32 %v4180_v52, %v3770_v6  ;;  %v3750_v61 = vpop.f32.mrb[50].mxu0  ;;  %v2662_v7 = vpop.f32.mrb[51].mxu1 }
 0x2a8   :  { %v3048_v59 = vmul.f32 %v4178_v54, %v3750_v61  ;;  %v3055_v56 = vmul.f32 %v4182_v53, %v2662_v7  ;;  %v2533_v9 = vpop.f32.mrb[51].mxu0  ;;  %v1884_v6 = vpop.xlane.xlu1 %1883 }
 0x2a9   :  { %3120 = vst.msk [vmem:[%s5729_s4 + $0x158] sm:$0xff] %vm180_vm0, %v3056_v0  ;;  %v3047_v45 = vmul.f32 %v4184_v32, %v2533_v9  ;;  %v1881_v7 = vpop.xlane.xlu0 %1880  ;;  %4227 = vrcp.f32 %v1884_v6 }
 0x2aa   :  { %3112 = vst.msk [vmem:[%s5729_s4 + $0x118] sm:$0xff] %vm180_vm0, %v3048_v59  ;;  %3119 = vst.msk [vmem:[%s5729_s4 + $0x150] sm:$0xff] %vm180_vm0, %v3055_v56  ;;  %4229 = vrcp.f32 %v1881_v7  ;;  %v4218_v59 = vpop.eup %4217 }
 0x2ab   :  { %3111 = vst.msk [vmem:[%s5729_s4 + $0x110] sm:$0xff] %vm180_vm0, %v3047_v45  ;;  %4231 = vrcp.f32 %v1857_v5  ;;  %v4220_v56 = vpop.eup %4219 }
 0x2ac   :  { %v4222_v45 = vpop.eup %4221 }
 0x2ae   :  { %v3773_v27 = vpop.f32.mrb[52].mxu1 }
 0x2af   :  { %v3058_v30 = vmul.f32 %v4188_v22, %v3773_v27  ;;  %v3753_v19 = vpop.f32.mrb[52].mxu0  ;;  %v2672_v23 = vpop.f32.mrb[53].mxu1 }
 0x2b0   :  { %v3050_v16 = vmul.f32 %v4186_v25, %v3753_v19  ;;  %v3057_v33 = vmul.f32 %v4190_v21, %v2672_v23  ;;  %v2543_v13 = vpop.f32.mrb[53].mxu0  ;;  %v4224_v22 = vpop.eup %4223 }
 0x2b1   :  { %3122 = vst.msk [vmem:[%s5729_s4 + $0x168] sm:$0xff] %vm180_vm0, %v3058_v30  ;;  %v3049_v18 = vmul.f32 %v4192_v44, %v2543_v13  ;;  %v4226_v23 = vpop.eup %4225 }
 0x2b2   :  { %3114 = vst.msk [vmem:[%s5729_s4 + $0x128] sm:$0xff] %vm180_vm0, %v3050_v16  ;;  %3121 = vst.msk [vmem:[%s5729_s4 + $0x160] sm:$0xff] %vm180_vm0, %v3057_v33 }
 0x2b3   :  { %3113 = vst.msk [vmem:[%s5729_s4 + $0x120] sm:$0xff] %vm180_vm0, %v3049_v18  ;;  %v4228_v44 = vpop.eup %4227 }
 0x2b4   :  { %v4230_v16 = vpop.eup %4229 }
 0x2b5   :  { %v4232_v15 = vpop.eup %4231 }
 0x2b6   :  { %v3776_v8 = vpop.f32.mrb[54].mxu1 }
 0x2b7   :  { %v3060_v26 = vmul.f32 %v4196_v14, %v3776_v8  ;;  %v3756_v28 = vpop.f32.mrb[54].mxu0  ;;  %v2682_v17 = vpop.f32.mrb[55].mxu1 }
 0x2b8   :  { %v3052_v24 = vmul.f32 %v4194_v31, %v3756_v28  ;;  %v3059_v38 = vmul.f32 %v4198_v57, %v2682_v17  ;;  %v2553_v39 = vpop.f32.mrb[55].mxu0 }
 0x2b9   :  { %3124 = vst.msk [vmem:[%s5729_s4 + $0x178] sm:$0xff] %vm180_vm0, %v3060_v26  ;;  %v3051_v41 = vmul.f32 %v4200_v48, %v2553_v39 }
 0x2ba   :  { %3116 = vst.msk [vmem:[%s5729_s4 + $0x138] sm:$0xff] %vm180_vm0, %v3052_v24  ;;  %3123 = vst.msk [vmem:[%s5729_s4 + $0x170] sm:$0xff] %vm180_vm0, %v3059_v38 }
 0x2bb   :  { %3115 = vst.msk [vmem:[%s5729_s4 + $0x130] sm:$0xff] %vm180_vm0, %v3051_v41 }
 0x2be   :  { %v3807_v63 = vpop.f32.mrb[56].mxu1 }
 0x2bf   :  { %v3070_v1 = vmul.f32 %v4204_v58, %v3807_v63  ;;  %v3787_v40 = vpop.f32.mrb[56].mxu0  ;;  %v2910_v36 = vpop.f32.mrb[57].mxu1 }
 0x2c0   :  { %v3062_v46 = vmul.f32 %v4202_v62, %v3787_v40  ;;  %v3069_v50 = vmul.f32 %v4206_v35, %v2910_v36  ;;  %v2781_v29 = vpop.f32.mrb[57].mxu0 }
 0x2c1   :  { %3134 = vst.msk [vmem:[%s5729_s4 + $0x1c8] sm:$0xff] %vm180_vm0, %v3070_v1  ;;  %v3061_v49 = vmul.f32 %v4208_v11, %v2781_v29 }
 0x2c2   :  { %3126 = vst.msk [vmem:[%s5729_s4 + $0x188] sm:$0xff] %vm180_vm0, %v3062_v46  ;;  %3133 = vst.msk [vmem:[%s5729_s4 + $0x1c0] sm:$0xff] %vm180_vm0, %v3069_v50 }
 0x2c3   :  { %3125 = vst.msk [vmem:[%s5729_s4 + $0x180] sm:$0xff] %vm180_vm0, %v3061_v49 }
 0x2c6   :  { %v3810_v55 = vpop.f32.mrb[58].mxu1 }
 0x2c7   :  { %v3072_v12 = vmul.f32 %v4212_v34, %v3810_v55  ;;  %v3790_v54 = vpop.f32.mrb[58].mxu0  ;;  %v2920_v52 = vpop.f32.mrb[59].mxu1 }
 0x2c8   :  { %v3064_v53 = vmul.f32 %v4210_v42, %v3790_v54  ;;  %v3071_v0 = vmul.f32 %v4214_v60, %v2920_v52  ;;  %v2791_v61 = vpop.f32.mrb[59].mxu0 }
 0x2c9   :  { %3136 = vst.msk [vmem:[%s5729_s4 + $0x1d8] sm:$0xff] %vm180_vm0, %v3072_v12  ;;  %v3063_v32 = vmul.f32 %v4216_v3, %v2791_v61 }
 0x2ca   :  { %3128 = vst.msk [vmem:[%s5729_s4 + $0x198] sm:$0xff] %vm180_vm0, %v3064_v53  ;;  %3135 = vst.msk [vmem:[%s5729_s4 + $0x1d0] sm:$0xff] %vm180_vm0, %v3071_v0 }
 0x2cb   :  { %3127 = vst.msk [vmem:[%s5729_s4 + $0x190] sm:$0xff] %vm180_vm0, %v3063_v32 }
 0x2ce   :  { %v3813_v9 = vpop.f32.mrb[60].mxu1 }
 0x2cf   :  { %v3074_v10 = vmul.f32 %v4220_v56, %v3813_v9  ;;  %v3793_v2 = vpop.f32.mrb[60].mxu0  ;;  %v2930_v25 = vpop.f32.mrb[61].mxu1 }
 0x2d0   :  { %v3066_v27 = vmul.f32 %v4218_v59, %v3793_v2  ;;  %v3073_v21 = vmul.f32 %v4222_v45, %v2930_v25  ;;  %v2801_v30 = vpop.f32.mrb[61].mxu0 }
 0x2d1   :  { %3138 = vst.msk [vmem:[%s5729_s4 + $0x1e8] sm:$0xff] %vm180_vm0, %v3074_v10  ;;  %v3065_v19 = vmul.f32 %v4224_v22, %v2801_v30 }
 0x2d2   :  { %3130 = vst.msk [vmem:[%s5729_s4 + $0x1a8] sm:$0xff] %vm180_vm0, %v3066_v27  ;;  %3137 = vst.msk [vmem:[%s5729_s4 + $0x1e0] sm:$0xff] %vm180_vm0, %v3073_v21 }
 0x2d3   :  { %3129 = vst.msk [vmem:[%s5729_s4 + $0x1a0] sm:$0xff] %vm180_vm0, %v3065_v19 }
 0x2d5   :  { %v3816_v47 = vpop.f32.mrb[62].mxu1 }
 0x2d6   :  { %v3076_v33 = vmul.f32 %v4228_v44, %v3816_v47  ;;  %v3796_v13 = vpop.f32.mrb[62].mxu0  ;;  %v2940_v18 = vpop.f32.mrb[63].mxu1 }
 0x2d7   :  { %v3068_v31 = vmul.f32 %v4226_v23, %v3796_v13  ;;  %v3075_v14 = vmul.f32 %v4230_v16, %v2940_v18  ;;  %v2811_v4 = vpop.f32.mrb[63].mxu0 }
 0x2d8   :  { %3140 = vst.msk [vmem:[%s5729_s4 + $0x1f8] sm:$0xff] %vm180_vm0, %v3076_v33  ;;  %v3067_v8 = vmul.f32 %v4232_v15, %v2811_v4 }
 0x2d9   :  { %3132 = vst.msk [vmem:[%s5729_s4 + $0x1b8] sm:$0xff] %vm180_vm0, %v3068_v31  ;;  %3139 = vst.msk [vmem:[%s5729_s4 + $0x1f0] sm:$0xff] %vm180_vm0, %v3075_v14 }
 0x2da   :  { %3131 = vst.msk [vmem:[%s5729_s4 + $0x1b0] sm:$0xff] %vm180_vm0, %v3067_v8 }

</bundles_post_ra>
